<compile_context>
chip_gen: v6e
topology: v6e:2x2x1
jax: 0.10.0
libtpu: 0.0.40
codegen_flags: <defaults>
</compile_context>

<pallas_src>
import functools

import numpy as np
import jax
import jax.numpy as jnp
from jax.experimental import pallas as pl
from jax.experimental.pallas import tpu as pltpu

LRELU_SLOPE = 0.1


def get_2d_padding(kernel_size, dilation=(1, 1)):
    return ((kernel_size[0] - 1) * dilation[0] // 2,
            (kernel_size[1] - 1) * dilation[1] // 2)


# -----------------------------------------------------------------------------
# Layer plan / parameters (mirrors the PyTorch module structure)
# -----------------------------------------------------------------------------
def build_plan(cfg, n_octaves):
    c_pre = cfg.in_channels * 2
    plan = []
    # conv_pres (per octave), no activation, not in fmap
    for _ in range(n_octaves):
        ph, pw = get_2d_padding((3, 9))
        plan.append(dict(KH=3, KW=9, Cin=c_pre, Cout=c_pre, sw=1, dh=1,
                         ph=ph, pw=pw, act=False, fmap=False))
    # convs[0]
    ph, pw = get_2d_padding((3, 9))
    plan.append(dict(KH=3, KW=9, Cin=c_pre, Cout=cfg.filters, sw=1, dh=1,
                     ph=ph, pw=pw, act=True, fmap=True))
    in_chs = min(cfg.filters_scale * cfg.filters, cfg.max_filters)
    # dilated, freq-strided convs
    for i, d in enumerate(cfg.dilations):
        out_chs = min((cfg.filters_scale ** (i + 1)) * cfg.filters,
                      cfg.max_filters)
        ph, pw = get_2d_padding((3, 9), (d, 1))
        plan.append(dict(KH=3, KW=9, Cin=in_chs, Cout=out_chs, sw=2, dh=d,
                         ph=ph, pw=pw, act=True, fmap=True))
        in_chs = out_chs
    # final 3x3 conv (activated, in fmap)
    out_chs = min((cfg.filters_scale ** (len(cfg.dilations) + 1)) * cfg.filters,
                  cfg.max_filters)
    ph, pw = get_2d_padding((3, 3))
    plan.append(dict(KH=3, KW=3, Cin=in_chs, Cout=out_chs, sw=1, dh=1,
                     ph=ph, pw=pw, act=True, fmap=True))
    # conv_post: no activation, not in fmap (it is the latent output)
    ph, pw = get_2d_padding((3, 3))
    plan.append(dict(KH=3, KW=3, Cin=out_chs, Cout=cfg.out_channels, sw=1,
                     dh=1, ph=ph, pw=pw, act=False, fmap=False))
    return plan


def _init_conv(key, cin, cout, kh, kw):
    """PyTorch-Conv2d-style uniform init.  weight_norm at initialization is
    numerically identical to the raw weight (g = ||v||)."""
    # TODO(synk): for trained checkpoints fold g*v/||v|| into w4 on the host.
    k1, k2 = jax.random.split(key)
    fan_in = cin * kh * kw
    bound = 1.0 / (float(fan_in) ** 0.5)
    w4 = jax.random.uniform(k1, (kh, kw, cin, cout), jnp.float32, -bound, bound)
    b = jax.random.uniform(k2, (1, cout), jnp.float32, -bound, bound)
    return w4, b


def build_params(key, cfg, n_octaves):
    plan = build_plan(cfg, n_octaves)
    keys = jax.random.split(key, len(plan))
    weights = [_init_conv(k, s["Cin"], s["Cout"], s["KH"], s["KW"])
               for k, s in zip(keys, plan)]
    return {"plan": plan, "weights": weights}


# -----------------------------------------------------------------------------
# Host-side weight prep: fold frequency kernel / stride / padding into
# block-Toeplitz matrices acting on lane-dense (T, W*Cin) activation slabs.
# -----------------------------------------------------------------------------
def _bt_from_w4(w4, win, sw, pw):
    """(KH,KW,Cin,Cout) -> (KH*win*Cin, wout*Cout) block-Toeplitz matrix over
    the UNPADDED input width `win` (frequency zero-padding folded in)."""
    KH, KW, Cin, Cout = w4.shape
    wout = (win + 2 * pw - KW) // sw + 1
    bt = np.zeros((KH, win, Cin, wout, Cout), np.float32)
    for wo in range(wout):
        for kw in range(KW):
            wi = wo * sw - pw + kw
            if 0 <= wi < win:
                bt[:, wi, :, wo, :] = w4[:, kw, :, :]
    return bt.reshape(KH * win * Cin, wout * Cout), wout


def _bt_conv_pres(w4_list, bpo, pw):
    """All per-octave conv_pres convs fused into one block-diagonal (per
    octave) block-Toeplitz matrix — no cross-octave coupling."""
    KH, KW, Cin, Cout = w4_list[0].shape
    win = len(w4_list) * bpo
    bt = np.zeros((KH, win, Cin, win, Cout), np.float32)
    for o, w4 in enumerate(w4_list):
        for wo in range(bpo):
            for kw in range(KW):
                wi = wo - pw + kw              # stride 1
                if 0 <= wi < bpo:
                    bt[:, o * bpo + wi, :, o * bpo + wo, :] = w4[:, kw, :, :]
    return bt.reshape(KH * win * Cin, win * Cout)


def build_kernel_data(params, cfg, n_octaves, bins_per_octave):
    """Fused per-layer descriptors + one packed bf16 weight array and one
    packed f32 (pre-tiled) bias array, sliced with static offsets in-kernel."""
    plan, weights = params["plan"], params["weights"]
    n_bins = n_octaves * bins_per_octave
    c0 = cfg.in_channels * 2

    layers, mats = [], []

    # Fused conv_pres (all octaves -> one block-diagonal matmul).
    ph, pw = get_2d_padding((3, 9))
    bt = _bt_conv_pres([np.asarray(weights[i][0]) for i in range(n_octaves)],
                       bins_per_octave, pw)
    b_pre = np.concatenate(
        [np.tile(np.asarray(weights[i][1]).reshape(-1), bins_per_octave)
         for i in range(n_octaves)])
    layers.append(dict(KH=3, dh=1, ph=ph, K=bt.shape[0], N=bt.shape[1],
                       Wout=n_bins, Cout=c0, act=False, fmap=False))
    mats.append((bt, b_pre))

    win = n_bins
    for li in range(n_octaves, len(plan)):
        spec = plan[li]
        w4 = np.asarray(weights[li][0])
        b = np.asarray(weights[li][1]).reshape(-1)
        bt, wout = _bt_from_w4(w4, win, spec["sw"], spec["pw"])
        layers.append(dict(KH=spec["KH"], dh=spec["dh"], ph=spec["ph"],
                           K=bt.shape[0], N=bt.shape[1], Wout=wout,
                           Cout=spec["Cout"], act=spec["act"],
                           fmap=spec["fmap"]))
        mats.append((bt, np.tile(b, wout)))
        win = wout

    # Pack everything into one weight and one bias array; 128-aligned slots.
    k_max = max(l["K"] for l in layers)
    off = 0
    for l in layers:
        l["off"] = off
        off = -(-(off + l["N"]) // 128) * 128
    n_total = max(off, 128)
    w_pack = np.zeros((k_max, n_total), np.float32)
    b_pack = np.zeros((1, n_total), np.float32)
    for l, (bt, bias) in zip(layers, mats):
        w_pack[:l["K"], l["off"]:l["off"] + l["N"]] = bt
        b_pack[0, l["off"]:l["off"] + l["N"]] = bias
    # TODO(synk): at full CQT resolution (large n_bins * filters) the
    # block-Toeplitz pack grows O(n_bins^2 * C^2); tile the frequency axis
    # (per-tap block-diagonal matmuls) before using this path there.
    return layers, jnp.asarray(w_pack, jnp.bfloat16), jnp.asarray(b_pack)


# -----------------------------------------------------------------------------
# Fused Pallas kernel: one grid step = one batch element, all layers.
# -----------------------------------------------------------------------------
def _dcqt_kernel(layers, z_ref, w_ref, b_ref, *out_refs):
    n_fmap = sum(1 for l in layers if l["fmap"])
    x = z_ref[0]                               # (T, n_bins*C0) f32, lane-dense
    fmap_idx = 0
    acc = None
    for l in layers:
        t, cw = x.shape
        # Time taps = sublane shifts of the activation slab (time zero-padding
        # realized as a single zero-block concat per tap; frequency padding is
        # already folded into the block-Toeplitz weight).
        taps = []
        for kh in range(l["KH"]):
            shift = kh * l["dh"] - l["ph"]
            if shift < 0:
                zr = jnp.zeros((-shift, cw), x.dtype)
                taps.append(jnp.concatenate([zr, x[0:t + shift, :]], axis=0))
            elif shift > 0:
                zr = jnp.zeros((shift, cw), x.dtype)
                taps.append(jnp.concatenate([x[shift:t, :], zr], axis=0))
            else:
                taps.append(x)
        patch = jnp.concatenate(taps, axis=1).astype(jnp.bfloat16)
        w = w_ref[0:l["K"], l["off"]:l["off"] + l["N"]]          # bf16
        acc = jnp.dot(patch, w, preferred_element_type=jnp.float32)
        acc = acc + b_ref[0:1, l["off"]:l["off"] + l["N"]]       # f32 bias
        if l["act"]:
            acc = jnp.where(acc >= 0.0, acc, LRELU_SLOPE * acc)  # f32 LeakyReLU
        if l["fmap"]:
            # ONE contiguous lane-dense store per fmap layer.
            out_refs[fmap_idx][0] = acc.astype(out_refs[fmap_idx].dtype)
            fmap_idx += 1
        x = acc
    # conv_post result (not activated, not in fmap) -> latent output.
    out_refs[n_fmap][0] = acc.astype(out_refs[n_fmap].dtype)


# -----------------------------------------------------------------------------
# Wrapper
# -----------------------------------------------------------------------------
def discriminator_cqt_forward(z, params, cfg, n_octaves, bins_per_octave):
    """z: (B, n_bins, T, 2) float32 — CQT2010v2 'Complex' output.
    Returns (latent_z, fmap) in NCHW, matching the PyTorch module."""
    B, n_bins, T, C0 = z.shape
    assert n_bins == n_octaves * bins_per_octave
    assert C0 == cfg.in_channels * 2

    layers, w_pack, b_pack = build_kernel_data(params, cfg, n_octaves,
                                               bins_per_octave)

    # Lane-dense input slab: (B, T, n_bins*C0), lanes = (bin-major, channel).
    z_slab = jnp.transpose(z, (0, 2, 1, 3)).reshape(B, T, n_bins * C0)

    out_shapes, out_specs, out_meta = [], [], []
    for l in layers:
        if l["fmap"]:
            out_shapes.append(jax.ShapeDtypeStruct((B, T, l["N"]), z.dtype))
            out_specs.append(pl.BlockSpec((1, T, l["N"]), lambda i: (i, 0, 0)))
            out_meta.append((l["Wout"], l["Cout"]))
    last = layers[-1]
    out_shapes.append(jax.ShapeDtypeStruct((B, T, last["N"]), z.dtype))
    out_specs.append(pl.BlockSpec((1, T, last["N"]), lambda i: (i, 0, 0)))

    in_specs = [
        pl.BlockSpec((1, T, n_bins * C0), lambda i: (i, 0, 0)),
        pl.BlockSpec(w_pack.shape, lambda i: (0, 0)),
        pl.BlockSpec(b_pack.shape, lambda i: (0, 0)),
    ]

    # VMEM budget from the actual per-grid-step footprint (double-buffered I/O
    # blocks + headroom for in-kernel temporaries), capped below v7x physical.
    def nbytes(shape, dtype):
        n = 1
        for d in shape:
            n *= d
        return n * np.dtype(dtype).itemsize

    blk = (nbytes((1, T, n_bins * C0), z.dtype)
           + nbytes(w_pack.shape, w_pack.dtype)
           + nbytes(b_pack.shape, b_pack.dtype))
    for s in out_shapes:
        blk += nbytes(s.shape, s.dtype) // B
    vmem_limit = int(min(64 * 1024 * 1024, 4 * blk + 8 * 1024 * 1024))

    kernel = functools.partial(_dcqt_kernel, layers)
    outs = pl.pallas_call(
        kernel,
        out_shape=tuple(out_shapes),
        grid=(B,),
        in_specs=in_specs,
        out_specs=tuple(out_specs),
        compiler_params=pltpu.CompilerParams(
            dimension_semantics=("parallel",),
            vmem_limit_bytes=vmem_limit),
    )(z_slab, w_pack, b_pack)

    # NCHW plumbing (cheap XLA transposes) — kernel stores lane-dense slabs.
    fmap = [jnp.transpose(o.reshape(B, T, wout, cout), (0, 3, 1, 2))
            for o, (wout, cout) in zip(outs[:-1], out_meta)]
    latent_z = jnp.transpose(
        outs[-1].reshape(B, T, last["Wout"], last["Cout"]), (0, 3, 1, 2))
    return latent_z, fmap


# -----------------------------------------------------------------------------
# Pure-JAX reference (numerical sanity check)
# -----------------------------------------------------------------------------
def _conv2d_ref(x, w4, b, stride, dilation, padding):
    w_oihw = jnp.transpose(w4, (3, 2, 0, 1))
    out = jax.lax.conv_general_dilated(
        x, w_oihw, window_strides=stride,
        padding=[(padding[0], padding[0]), (padding[1], padding[1])],
        rhs_dilation=dilation,
        dimension_numbers=("NCHW", "OIHW", "NCHW"))
    return out + b.reshape(1, -1, 1, 1)


def _forward_ref(z, params, cfg, n_octaves, bins_per_octave):
    plan, weights = params["plan"], params["weights"]
    zc = jnp.stack([z[..., 0], z[..., 1]], axis=1)       # (B, 2, n_bins, T)
    zc = jnp.transpose(zc, (0, 1, 3, 2))                 # (B, 2, T, n_bins)
    latents = []
    for i in range(n_octaves):
        spec = plan[i]
        w4, b = weights[i]
        sl = zc[:, :, :, i * bins_per_octave:(i + 1) * bins_per_octave]
        latents.append(_conv2d_ref(sl, w4, b, (1, 1), (1, 1),
                                   (spec["ph"], spec["pw"])))
    latent = jnp.concatenate(latents, axis=-1)
    fmap = []
    li = n_octaves
    for spec in plan[n_octaves:-1]:
        w4, b = weights[li]
        li += 1
        latent = _conv2d_ref(latent, w4, b, (1, spec["sw"]), (spec["dh"], 1),
                             (spec["ph"], spec["pw"]))
        latent = jnp.where(latent >= 0.0, latent, LRELU_SLOPE * latent)
        fmap.append(latent)
    spec = plan[-1]
    w4, b = weights[-1]
    latent = _conv2d_ref(latent, w4, b, (1, 1), (1, 1),
                         (spec["ph"], spec["pw"]))
    return latent, fmap


class Cfg:
    filters = 16
    max_filters = 64
    filters_scale = 1
    dilations = [1, 2, 4]
    in_channels = 1
    out_channels = 1
    sampling_rate = 16000


if __name__ == "__main__":
    cfg = Cfg()
    n_octaves = 2
    bins_per_octave = 8
    B, T = 2, 16
    n_bins = n_octaves * bins_per_octave

    key = jax.random.PRNGKey(0)
    kz, kp = jax.random.split(key)
    # synthetic CQT 'Complex' output: (B, n_bins, T_frames, 2)
    z = jax.random.normal(kz, (B, n_bins, T, 2), jnp.float32)
    params = build_params(kp, cfg, n_octaves)

    latent_z, fmap = discriminator_cqt_forward(z, params, cfg, n_octaves,
                                               bins_per_octave)
    jax.block_until_ready(latent_z)
    for f in fmap:
        jax.block_until_ready(f)

    assert latent_z.shape == (B, cfg.out_channels, T, 2)
    assert len(fmap) == len(cfg.dilations) + 2
    assert fmap[0].shape == (B, cfg.filters, T, n_bins)

    # Numerical sanity check against a pure-JAX (f32) NCHW reference.
    ref_latent, ref_fmap = _forward_ref(z, params, cfg, n_octaves,
                                        bins_per_octave)
    assert jnp.allclose(latent_z, ref_latent, rtol=5e-2, atol=5e-2)
    for a, b in zip(fmap, ref_fmap):
        assert a.shape == b.shape
        assert jnp.allclose(a, b, rtol=5e-2, atol=5e-2)

    print("KERNEL_OK")
</pallas_src>

<mosaic_0001>
module attributes {stable_mosaic.version = 11 : i64} {
  func.func @_dcqt_kernel(%arg0: i32, %arg1: memref<1x16x32xf32, #tpu.memory_space<vmem>>, %arg2: memref<768x1024xbf16, #tpu.memory_space<vmem>>, %arg3: memref<1x1024xf32, #tpu.memory_space<vmem>>, %arg4: memref<1x16x256xf32, #tpu.memory_space<vmem>>, %arg5: memref<1x16x128xf32, #tpu.memory_space<vmem>>, %arg6: memref<1x16x64xf32, #tpu.memory_space<vmem>>, %arg7: memref<1x16x32xf32, #tpu.memory_space<vmem>>, %arg8: memref<1x16x32xf32, #tpu.memory_space<vmem>>, %arg9: memref<1x16x2xf32, #tpu.memory_space<vmem>>) attributes {dimension_semantics = [#tpu.dimension_semantics<parallel>], iteration_bounds = array<i64: 2>, scalar_prefetch = 0 : i64, scratch_operands = 0 : i64, tpu.core_type = #tpu.core_type<tc>, window_params = [{transform_indices = @transform_0, window_bounds = array<i64: 1, 16, 32>}, {pipeline_mode = #tpu.pipeline_mode<synchronous>, transform_indices = @transform_1, window_bounds = array<i64: 768, 1024>}, {pipeline_mode = #tpu.pipeline_mode<synchronous>, transform_indices = @transform_2, window_bounds = array<i64: 1, 1024>}, {transform_indices = @transform_3, window_bounds = array<i64: 1, 16, 256>}, {transform_indices = @transform_4, window_bounds = array<i64: 1, 16, 128>}, {transform_indices = @transform_5, window_bounds = array<i64: 1, 16, 64>}, {transform_indices = @transform_6, window_bounds = array<i64: 1, 16, 32>}, {transform_indices = @transform_7, window_bounds = array<i64: 1, 16, 32>}, {transform_indices = @transform_8, window_bounds = array<i64: 1, 16, 2>}]} {
    %c0 = arith.constant 0 : index
    %c0_0 = arith.constant 0 : index
    %c0_1 = arith.constant 0 : index
    %0 = vector.load %arg1[%c0, %c0_0, %c0_1] : memref<1x16x32xf32, #tpu.memory_space<vmem>>, vector<1x16x32xf32>
    %1 = vector.shape_cast %0 : vector<1x16x32xf32> to vector<16x32xf32>
    %cst = arith.constant 0.000000e+00 : f32
    %2 = vector.broadcast %cst : f32 to vector<1x32xf32>
    %3 = vector.extract_strided_slice %1 {offsets = [0, 0], sizes = [15, 32], strides = [1, 1]} : vector<16x32xf32> to vector<15x32xf32>
    %4 = tpu.concatenate %2, %3 in 0 : vector<1x32xf32>, vector<15x32xf32> -> vector<16x32xf32>
    %cst_2 = arith.constant 0.000000e+00 : f32
    %5 = vector.broadcast %cst_2 : f32 to vector<1x32xf32>
    %6 = vector.extract_strided_slice %1 {offsets = [1, 0], sizes = [15, 32], strides = [1, 1]} : vector<16x32xf32> to vector<15x32xf32>
    %7 = tpu.concatenate %6, %5 in 0 : vector<15x32xf32>, vector<1x32xf32> -> vector<16x32xf32>
    %8 = tpu.concatenate %4, %1, %7 in 1 : vector<16x32xf32>, vector<16x32xf32>, vector<16x32xf32> -> vector<16x96xf32>
    %9 = arith.truncf %8 : vector<16x96xf32> to vector<16x96xbf16>
    %c0_3 = arith.constant 0 : index
    %c0_4 = arith.constant 0 : index
    %10 = vector.load %arg2[%c0_3, %c0_4] : memref<768x1024xbf16, #tpu.memory_space<vmem>>, vector<96x32xbf16>
    %cst_5 = arith.constant dense<0.000000e+00> : vector<16x32xf32>
    %11 = tpu.matmul %9, %10, %cst_5 {dimension_numbers = #tpu.dot_dimension_numbers<[1], [0], [0], [1], [0, 0, 1, 1], [], []>} : vector<16x96xbf16>, vector<96x32xbf16>, vector<16x32xf32> -> vector<16x32xf32>
    %c0_6 = arith.constant 0 : index
    %c0_7 = arith.constant 0 : index
    %12 = vector.load %arg3[%c0_6, %c0_7] : memref<1x1024xf32, #tpu.memory_space<vmem>>, vector<1x32xf32>
    %13 = vector.broadcast %12 : vector<1x32xf32> to vector<16x32xf32>
    %14 = arith.addf %11, %13 : vector<16x32xf32>
    %cst_8 = arith.constant 0.000000e+00 : f32
    %15 = vector.broadcast %cst_8 : f32 to vector<1x32xf32>
    %16 = vector.extract_strided_slice %14 {offsets = [0, 0], sizes = [15, 32], strides = [1, 1]} : vector<16x32xf32> to vector<15x32xf32>
    %17 = tpu.concatenate %15, %16 in 0 : vector<1x32xf32>, vector<15x32xf32> -> vector<16x32xf32>
    %cst_9 = arith.constant 0.000000e+00 : f32
    %18 = vector.broadcast %cst_9 : f32 to vector<1x32xf32>
    %19 = vector.extract_strided_slice %14 {offsets = [1, 0], sizes = [15, 32], strides = [1, 1]} : vector<16x32xf32> to vector<15x32xf32>
    %20 = tpu.concatenate %19, %18 in 0 : vector<15x32xf32>, vector<1x32xf32> -> vector<16x32xf32>
    %21 = tpu.concatenate %17, %14, %20 in 1 : vector<16x32xf32>, vector<16x32xf32>, vector<16x32xf32> -> vector<16x96xf32>
    %22 = arith.truncf %21 : vector<16x96xf32> to vector<16x96xbf16>
    %c0_10 = arith.constant 0 : index
    %c128 = arith.constant 128 : index
    %23 = vector.load %arg2[%c0_10, %c128] : memref<768x1024xbf16, #tpu.memory_space<vmem>>, vector<96x256xbf16>
    %cst_11 = arith.constant dense<0.000000e+00> : vector<16x256xf32>
    %24 = tpu.matmul %22, %23, %cst_11 {dimension_numbers = #tpu.dot_dimension_numbers<[1], [0], [0], [1], [0, 0, 1, 1], [], []>} : vector<16x96xbf16>, vector<96x256xbf16>, vector<16x256xf32> -> vector<16x256xf32>
    %c0_12 = arith.constant 0 : index
    %c128_13 = arith.constant 128 : index
    %25 = vector.load %arg3[%c0_12, %c128_13] : memref<1x1024xf32, #tpu.memory_space<vmem>>, vector<1x256xf32>
    %26 = vector.broadcast %25 : vector<1x256xf32> to vector<16x256xf32>
    %27 = arith.addf %24, %26 : vector<16x256xf32>
    %cst_14 = arith.constant 0.000000e+00 : f32
    %28 = vector.broadcast %cst_14 : f32 to vector<16x256xf32>
    %29 = arith.cmpf oge, %27, %28 : vector<16x256xf32>
    %cst_15 = arith.constant 1.000000e-01 : f32
    %30 = vector.broadcast %cst_15 : f32 to vector<16x256xf32>
    %31 = arith.mulf %30, %27 : vector<16x256xf32>
    %32 = arith.select %29, %27, %31 : vector<16x256xi1>, vector<16x256xf32>
    %c0_16 = arith.constant 0 : index
    %c0_17 = arith.constant 0 : index
    %c0_18 = arith.constant 0 : index
    %33 = vector.load %arg4[%c0_16, %c0_17, %c0_18] : memref<1x16x256xf32, #tpu.memory_space<vmem>>, vector<1x16x256xf32>
    %34 = vector.shape_cast %33 : vector<1x16x256xf32> to vector<16x256xf32>
    %35 = vector.shape_cast %32 : vector<16x256xf32> to vector<1x16x256xf32>
    tpu.vector_store %arg4[%c0_16, %c0_17, %c0_18], %35 {strides = array<i32>} : memref<1x16x256xf32, #tpu.memory_space<vmem>>, vector<1x16x256xf32>,
    %cst_19 = arith.constant 0.000000e+00 : f32
    %36 = vector.broadcast %cst_19 : f32 to vector<1x256xf32>
    %37 = vector.extract_strided_slice %32 {offsets = [0, 0], sizes = [15, 256], strides = [1, 1]} : vector<16x256xf32> to vector<15x256xf32>
    %38 = tpu.concatenate %36, %37 in 0 : vector<1x256xf32>, vector<15x256xf32> -> vector<16x256xf32>
    %cst_20 = arith.constant 0.000000e+00 : f32
    %39 = vector.broadcast %cst_20 : f32 to vector<1x256xf32>
    %40 = vector.extract_strided_slice %32 {offsets = [1, 0], sizes = [15, 256], strides = [1, 1]} : vector<16x256xf32> to vector<15x256xf32>
    %41 = tpu.concatenate %40, %39 in 0 : vector<15x256xf32>, vector<1x256xf32> -> vector<16x256xf32>
    %42 = tpu.concatenate %38, %32, %41 in 1 : vector<16x256xf32>, vector<16x256xf32>, vector<16x256xf32> -> vector<16x768xf32>
    %43 = arith.truncf %42 : vector<16x768xf32> to vector<16x768xbf16>
    %c0_21 = arith.constant 0 : index
    %c384 = arith.constant 384 : index
    %44 = vector.load %arg2[%c0_21, %c384] : memref<768x1024xbf16, #tpu.memory_space<vmem>>, vector<768x128xbf16>
    %cst_22 = arith.constant dense<0.000000e+00> : vector<16x128xf32>
    %45 = tpu.matmul %43, %44, %cst_22 {dimension_numbers = #tpu.dot_dimension_numbers<[1], [0], [0], [1], [0, 0, 1, 1], [], []>} : vector<16x768xbf16>, vector<768x128xbf16>, vector<16x128xf32> -> vector<16x128xf32>
    %c0_23 = arith.constant 0 : index
    %c384_24 = arith.constant 384 : index
    %46 = vector.load %arg3[%c0_23, %c384_24] : memref<1x1024xf32, #tpu.memory_space<vmem>>, vector<1x128xf32>
    %47 = vector.broadcast %46 : vector<1x128xf32> to vector<16x128xf32>
    %48 = arith.addf %45, %47 : vector<16x128xf32>
    %cst_25 = arith.constant 0.000000e+00 : f32
    %49 = vector.broadcast %cst_25 : f32 to vector<16x128xf32>
    %50 = arith.cmpf oge, %48, %49 : vector<16x128xf32>
    %cst_26 = arith.constant 1.000000e-01 : f32
    %51 = vector.broadcast %cst_26 : f32 to vector<16x128xf32>
    %52 = arith.mulf %51, %48 : vector<16x128xf32>
    %53 = arith.select %50, %48, %52 : vector<16x128xi1>, vector<16x128xf32>
    %c0_27 = arith.constant 0 : index
    %c0_28 = arith.constant 0 : index
    %c0_29 = arith.constant 0 : index
    %54 = vector.load %arg5[%c0_27, %c0_28, %c0_29] : memref<1x16x128xf32, #tpu.memory_space<vmem>>, vector<1x16x128xf32>
    %55 = vector.shape_cast %54 : vector<1x16x128xf32> to vector<16x128xf32>
    %56 = vector.shape_cast %53 : vector<16x128xf32> to vector<1x16x128xf32>
    tpu.vector_store %arg5[%c0_27, %c0_28, %c0_29], %56 {strides = array<i32>} : memref<1x16x128xf32, #tpu.memory_space<vmem>>, vector<1x16x128xf32>,
    %cst_30 = arith.constant 0.000000e+00 : f32
    %57 = vector.broadcast %cst_30 : f32 to vector<2x128xf32>
    %58 = vector.extract_strided_slice %53 {offsets = [0, 0], sizes = [14, 128], strides = [1, 1]} : vector<16x128xf32> to vector<14x128xf32>
    %59 = tpu.concatenate %57, %58 in 0 : vector<2x128xf32>, vector<14x128xf32> -> vector<16x128xf32>
    %cst_31 = arith.constant 0.000000e+00 : f32
    %60 = vector.broadcast %cst_31 : f32 to vector<2x128xf32>
    %61 = vector.extract_strided_slice %53 {offsets = [2, 0], sizes = [14, 128], strides = [1, 1]} : vector<16x128xf32> to vector<14x128xf32>
    %62 = tpu.concatenate %61, %60 in 0 : vector<14x128xf32>, vector<2x128xf32> -> vector<16x128xf32>
    %63 = tpu.concatenate %59, %53, %62 in 1 : vector<16x128xf32>, vector<16x128xf32>, vector<16x128xf32> -> vector<16x384xf32>
    %64 = arith.truncf %63 : vector<16x384xf32> to vector<16x384xbf16>
    %c0_32 = arith.constant 0 : index
    %c512 = arith.constant 512 : index
    %65 = vector.load %arg2[%c0_32, %c512] : memref<768x1024xbf16, #tpu.memory_space<vmem>>, vector<384x64xbf16>
    %cst_33 = arith.constant dense<0.000000e+00> : vector<16x64xf32>
    %66 = tpu.matmul %64, %65, %cst_33 {dimension_numbers = #tpu.dot_dimension_numbers<[1], [0], [0], [1], [0, 0, 1, 1], [], []>} : vector<16x384xbf16>, vector<384x64xbf16>, vector<16x64xf32> -> vector<16x64xf32>
    %c0_34 = arith.constant 0 : index
    %c512_35 = arith.constant 512 : index
    %67 = vector.load %arg3[%c0_34, %c512_35] : memref<1x1024xf32, #tpu.memory_space<vmem>>, vector<1x64xf32>
    %68 = vector.broadcast %67 : vector<1x64xf32> to vector<16x64xf32>
    %69 = arith.addf %66, %68 : vector<16x64xf32>
    %cst_36 = arith.constant 0.000000e+00 : f32
    %70 = vector.broadcast %cst_36 : f32 to vector<16x64xf32>
    %71 = arith.cmpf oge, %69, %70 : vector<16x64xf32>
    %cst_37 = arith.constant 1.000000e-01 : f32
    %72 = vector.broadcast %cst_37 : f32 to vector<16x64xf32>
    %73 = arith.mulf %72, %69 : vector<16x64xf32>
    %74 = arith.select %71, %69, %73 : vector<16x64xi1>, vector<16x64xf32>
    %c0_38 = arith.constant 0 : index
    %c0_39 = arith.constant 0 : index
    %c0_40 = arith.constant 0 : index
    %75 = vector.load %arg6[%c0_38, %c0_39, %c0_40] : memref<1x16x64xf32, #tpu.memory_space<vmem>>, vector<1x16x64xf32>
    %76 = vector.shape_cast %75 : vector<1x16x64xf32> to vector<16x64xf32>
    %77 = vector.shape_cast %74 : vector<16x64xf32> to vector<1x16x64xf32>
    tpu.vector_store %arg6[%c0_38, %c0_39, %c0_40], %77 {strides = array<i32>} : memref<1x16x64xf32, #tpu.memory_space<vmem>>, vector<1x16x64xf32>,
    %cst_41 = arith.constant 0.000000e+00 : f32
    %78 = vector.broadcast %cst_41 : f32 to vector<4x64xf32>
    %79 = vector.extract_strided_slice %74 {offsets = [0, 0], sizes = [12, 64], strides = [1, 1]} : vector<16x64xf32> to vector<12x64xf32>
    %80 = tpu.concatenate %78, %79 in 0 : vector<4x64xf32>, vector<12x64xf32> -> vector<16x64xf32>
    %cst_42 = arith.constant 0.000000e+00 : f32
    %81 = vector.broadcast %cst_42 : f32 to vector<4x64xf32>
    %82 = vector.extract_strided_slice %74 {offsets = [4, 0], sizes = [12, 64], strides = [1, 1]} : vector<16x64xf32> to vector<12x64xf32>
    %83 = tpu.concatenate %82, %81 in 0 : vector<12x64xf32>, vector<4x64xf32> -> vector<16x64xf32>
    %84 = tpu.concatenate %80, %74, %83 in 1 : vector<16x64xf32>, vector<16x64xf32>, vector<16x64xf32> -> vector<16x192xf32>
    %85 = arith.truncf %84 : vector<16x192xf32> to vector<16x192xbf16>
    %c0_43 = arith.constant 0 : index
    %c640 = arith.constant 640 : index
    %86 = vector.load %arg2[%c0_43, %c640] : memref<768x1024xbf16, #tpu.memory_space<vmem>>, vector<192x32xbf16>
    %cst_44 = arith.constant dense<0.000000e+00> : vector<16x32xf32>
    %87 = tpu.matmul %85, %86, %cst_44 {dimension_numbers = #tpu.dot_dimension_numbers<[1], [0], [0], [1], [0, 0, 1, 1], [], []>} : vector<16x192xbf16>, vector<192x32xbf16>, vector<16x32xf32> -> vector<16x32xf32>
    %c0_45 = arith.constant 0 : index
    %c640_46 = arith.constant 640 : index
    %88 = vector.load %arg3[%c0_45, %c640_46] : memref<1x1024xf32, #tpu.memory_space<vmem>>, vector<1x32xf32>
    %89 = vector.broadcast %88 : vector<1x32xf32> to vector<16x32xf32>
    %90 = arith.addf %87, %89 : vector<16x32xf32>
    %cst_47 = arith.constant 0.000000e+00 : f32
    %91 = vector.broadcast %cst_47 : f32 to vector<16x32xf32>
    %92 = arith.cmpf oge, %90, %91 : vector<16x32xf32>
    %cst_48 = arith.constant 1.000000e-01 : f32
    %93 = vector.broadcast %cst_48 : f32 to vector<16x32xf32>
    %94 = arith.mulf %93, %90 : vector<16x32xf32>
    %95 = arith.select %92, %90, %94 : vector<16x32xi1>, vector<16x32xf32>
    %c0_49 = arith.constant 0 : index
    %c0_50 = arith.constant 0 : index
    %c0_51 = arith.constant 0 : index
    %96 = vector.load %arg7[%c0_49, %c0_50, %c0_51] : memref<1x16x32xf32, #tpu.memory_space<vmem>>, vector<1x16x32xf32>
    %97 = vector.shape_cast %96 : vector<1x16x32xf32> to vector<16x32xf32>
    %98 = vector.shape_cast %95 : vector<16x32xf32> to vector<1x16x32xf32>
    tpu.vector_store %arg7[%c0_49, %c0_50, %c0_51], %98 {strides = array<i32>} : memref<1x16x32xf32, #tpu.memory_space<vmem>>, vector<1x16x32xf32>,
    %cst_52 = arith.constant 0.000000e+00 : f32
    %99 = vector.broadcast %cst_52 : f32 to vector<1x32xf32>
    %100 = vector.extract_strided_slice %95 {offsets = [0, 0], sizes = [15, 32], strides = [1, 1]} : vector<16x32xf32> to vector<15x32xf32>
    %101 = tpu.concatenate %99, %100 in 0 : vector<1x32xf32>, vector<15x32xf32> -> vector<16x32xf32>
    %cst_53 = arith.constant 0.000000e+00 : f32
    %102 = vector.broadcast %cst_53 : f32 to vector<1x32xf32>
    %103 = vector.extract_strided_slice %95 {offsets = [1, 0], sizes = [15, 32], strides = [1, 1]} : vector<16x32xf32> to vector<15x32xf32>
    %104 = tpu.concatenate %103, %102 in 0 : vector<15x32xf32>, vector<1x32xf32> -> vector<16x32xf32>
    %105 = tpu.concatenate %101, %95, %104 in 1 : vector<16x32xf32>, vector<16x32xf32>, vector<16x32xf32> -> vector<16x96xf32>
    %106 = arith.truncf %105 : vector<16x96xf32> to vector<16x96xbf16>
    %c0_54 = arith.constant 0 : index
    %c768 = arith.constant 768 : index
    %107 = vector.load %arg2[%c0_54, %c768] : memref<768x1024xbf16, #tpu.memory_space<vmem>>, vector<96x32xbf16>
    %cst_55 = arith.constant dense<0.000000e+00> : vector<16x32xf32>
    %108 = tpu.matmul %106, %107, %cst_55 {dimension_numbers = #tpu.dot_dimension_numbers<[1], [0], [0], [1], [0, 0, 1, 1], [], []>} : vector<16x96xbf16>, vector<96x32xbf16>, vector<16x32xf32> -> vector<16x32xf32>
    %c0_56 = arith.constant 0 : index
    %c768_57 = arith.constant 768 : index
    %109 = vector.load %arg3[%c0_56, %c768_57] : memref<1x1024xf32, #tpu.memory_space<vmem>>, vector<1x32xf32>
    %110 = vector.broadcast %109 : vector<1x32xf32> to vector<16x32xf32>
    %111 = arith.addf %108, %110 : vector<16x32xf32>
    %cst_58 = arith.constant 0.000000e+00 : f32
    %112 = vector.broadcast %cst_58 : f32 to vector<16x32xf32>
    %113 = arith.cmpf oge, %111, %112 : vector<16x32xf32>
    %cst_59 = arith.constant 1.000000e-01 : f32
    %114 = vector.broadcast %cst_59 : f32 to vector<16x32xf32>
    %115 = arith.mulf %114, %111 : vector<16x32xf32>
    %116 = arith.select %113, %111, %115 : vector<16x32xi1>, vector<16x32xf32>
    %c0_60 = arith.constant 0 : index
    %c0_61 = arith.constant 0 : index
    %c0_62 = arith.constant 0 : index
    %117 = vector.load %arg8[%c0_60, %c0_61, %c0_62] : memref<1x16x32xf32, #tpu.memory_space<vmem>>, vector<1x16x32xf32>
    %118 = vector.shape_cast %117 : vector<1x16x32xf32> to vector<16x32xf32>
    %119 = vector.shape_cast %116 : vector<16x32xf32> to vector<1x16x32xf32>
    tpu.vector_store %arg8[%c0_60, %c0_61, %c0_62], %119 {strides = array<i32>} : memref<1x16x32xf32, #tpu.memory_space<vmem>>, vector<1x16x32xf32>,
    %cst_63 = arith.constant 0.000000e+00 : f32
    %120 = vector.broadcast %cst_63 : f32 to vector<1x32xf32>
    %121 = vector.extract_strided_slice %116 {offsets = [0, 0], sizes = [15, 32], strides = [1, 1]} : vector<16x32xf32> to vector<15x32xf32>
    %122 = tpu.concatenate %120, %121 in 0 : vector<1x32xf32>, vector<15x32xf32> -> vector<16x32xf32>
    %cst_64 = arith.constant 0.000000e+00 : f32
    %123 = vector.broadcast %cst_64 : f32 to vector<1x32xf32>
    %124 = vector.extract_strided_slice %116 {offsets = [1, 0], sizes = [15, 32], strides = [1, 1]} : vector<16x32xf32> to vector<15x32xf32>
    %125 = tpu.concatenate %124, %123 in 0 : vector<15x32xf32>, vector<1x32xf32> -> vector<16x32xf32>
    %126 = tpu.concatenate %122, %116, %125 in 1 : vector<16x32xf32>, vector<16x32xf32>, vector<16x32xf32> -> vector<16x96xf32>
    %127 = arith.truncf %126 : vector<16x96xf32> to vector<16x96xbf16>
    %c0_65 = arith.constant 0 : index
    %c896 = arith.constant 896 : index
    %128 = vector.load %arg2[%c0_65, %c896] : memref<768x1024xbf16, #tpu.memory_space<vmem>>, vector<96x2xbf16>
    %cst_66 = arith.constant dense<0.000000e+00> : vector<16x2xf32>
    %129 = tpu.matmul %127, %128, %cst_66 {dimension_numbers = #tpu.dot_dimension_numbers<[1], [0], [0], [1], [0, 0, 1, 1], [], []>} : vector<16x96xbf16>, vector<96x2xbf16>, vector<16x2xf32> -> vector<16x2xf32>
    %c0_67 = arith.constant 0 : index
    %c896_68 = arith.constant 896 : index
    %130 = vector.load %arg3[%c0_67, %c896_68] : memref<1x1024xf32, #tpu.memory_space<vmem>>, vector<1x2xf32>
    %131 = vector.broadcast %130 : vector<1x2xf32> to vector<16x2xf32>
    %132 = arith.addf %129, %131 : vector<16x2xf32>
    %c0_69 = arith.constant 0 : index
    %c0_70 = arith.constant 0 : index
    %c0_71 = arith.constant 0 : index
    %133 = vector.load %arg9[%c0_69, %c0_70, %c0_71] : memref<1x16x2xf32, #tpu.memory_space<vmem>>, vector<1x16x2xf32>
    %134 = vector.shape_cast %133 : vector<1x16x2xf32> to vector<16x2xf32>
    %135 = vector.shape_cast %132 : vector<16x2xf32> to vector<1x16x2xf32>
    tpu.vector_store %arg9[%c0_69, %c0_70, %c0_71], %135 {strides = array<i32>} : memref<1x16x2xf32, #tpu.memory_space<vmem>>, vector<1x16x2xf32>,
    return
  }
  func.func @transform_0(%arg0: i32) -> (i32, i32, i32) {
    %c0_i32 = arith.constant 0 : i32
    %c0_i32_0 = arith.constant 0 : i32
    %c0_i32_1 = arith.constant 0 : i32
    return %arg0, %c0_i32, %c0_i32_0 : i32, i32, i32
  }
  func.func @transform_1(%arg0: i32) -> (i32, i32) {
    %c0_i32 = arith.constant 0 : i32
    %c0_i32_0 = arith.constant 0 : i32
    %c0_i32_1 = arith.constant 0 : i32
    return %c0_i32, %c0_i32_0 : i32, i32
  }
  func.func @transform_2(%arg0: i32) -> (i32, i32) {
    %c0_i32 = arith.constant 0 : i32
    %c0_i32_0 = arith.constant 0 : i32
    %c0_i32_1 = arith.constant 0 : i32
    return %c0_i32, %c0_i32_0 : i32, i32
  }
  func.func @transform_3(%arg0: i32) -> (i32, i32, i32) {
    %c0_i32 = arith.constant 0 : i32
    %c0_i32_0 = arith.constant 0 : i32
    %c0_i32_1 = arith.constant 0 : i32
    return %arg0, %c0_i32, %c0_i32_0 : i32, i32, i32
  }
  func.func @transform_4(%arg0: i32) -> (i32, i32, i32) {
    %c0_i32 = arith.constant 0 : i32
    %c0_i32_0 = arith.constant 0 : i32
    %c0_i32_1 = arith.constant 0 : i32
    return %arg0, %c0_i32, %c0_i32_0 : i32, i32, i32
  }
  func.func @transform_5(%arg0: i32) -> (i32, i32, i32) {
    %c0_i32 = arith.constant 0 : i32
    %c0_i32_0 = arith.constant 0 : i32
    %c0_i32_1 = arith.constant 0 : i32
    return %arg0, %c0_i32, %c0_i32_0 : i32, i32, i32
  }
  func.func @transform_6(%arg0: i32) -> (i32, i32, i32) {
    %c0_i32 = arith.constant 0 : i32
    %c0_i32_0 = arith.constant 0 : i32
    %c0_i32_1 = arith.constant 0 : i32
    return %arg0, %c0_i32, %c0_i32_0 : i32, i32, i32
  }
  func.func @transform_7(%arg0: i32) -> (i32, i32, i32) {
    %c0_i32 = arith.constant 0 : i32
    %c0_i32_0 = arith.constant 0 : i32
    %c0_i32_1 = arith.constant 0 : i32
    return %arg0, %c0_i32, %c0_i32_0 : i32, i32, i32
  }
  func.func @transform_8(%arg0: i32) -> (i32, i32, i32) {
    %c0_i32 = arith.constant 0 : i32
    %c0_i32_0 = arith.constant 0 : i32
    %c0_i32_1 = arith.constant 0 : i32
    return %arg0, %c0_i32, %c0_i32_0 : i32, i32, i32
  }
}

</mosaic_0001>

<bundles_post_ra>
// kernel: tpu_custom_call.1
= control target key start
LH: loop header
LB: loop body
LE: loop exit
PB: predicated region body
PF: predicated region fallthrough
CT: control target
= control target key end

     0   :  { %s3726_s0 = inlined_call_operand.hbm [shape: f32[2,16,32], index: 0, kind: input, shape index: {}]   ;;  %s3727_s1 = inlined_call_operand.hbm [shape: bf16[768,1024], index: 1, kind: input, shape index: {}]   ;;  %s3728_s2 = inlined_call_operand.hbm [shape: f32[1,1024], index: 2, kind: input, shape index: {}]   ;;  %s3729_s3 = inlined_call_operand.hbm [shape: f32[2,16,256], index: 3, kind: output, shape index: {0}]   ;;  %s3730_s4 = inlined_call_operand.hbm [shape: f32[2,16,128], index: 4, kind: output, shape index: {1}]   ;;  %s3731_s5 = inlined_call_operand.hbm [shape: f32[2,16,64], index: 5, kind: output, shape index: {2}]   ;;  %s3732_s6 = inlined_call_operand.hbm [shape: f32[2,16,32], index: 6, kind: output, shape index: {3}]   ;;  %s3733_s7 = inlined_call_operand.hbm [shape: f32[2,16,32], index: 7, kind: output, shape index: {4}]   ;;  %s3734_s8 = inlined_call_operand.vmem [shape: f32[2,16,2], index: 8, kind: output, shape index: {5}]  }
   0x1   :  { %3749 = sst [smem:[#allocation24_spill]] %s3726_s0 }
   0x2   :  { %3750 = sst [smem:[#allocation25_spill]] %s3727_s1 }
   0x3   :  { %3751 = sst [smem:[#allocation26_spill]] %s3728_s2 }
   0x4   :  { %3752 = sst [smem:[#allocation27_spill]] %s3730_s4 }
   0x5   :  { %3753 = sst [smem:[#allocation28_spill]] %s3732_s6 }
   0x6   :  { %14 = vsyncpa [#allocation3], 0 }
   0x7   :  { %16 = vsyncpa [#allocation3 + $0x1], 0 }
   0x8   :  { %17 = vsyncpa [#allocation6], 0 }
   0x9   :  { %18 = vsyncpa [#allocation4], 0 }
   0xa   :  { %20 = vsyncpa [#allocation4 + $0x1], 0 }
   0xb   :  { %21 = vsyncpa [#allocation10], 0 }
   0xc   :  { %23 = vsyncpa [#allocation10 + $0x1], 0 }
   0xd   :  { %24 = vsyncpa [#allocation13], 0 }
   0xe   :  { %26 = vsyncpa [#allocation13 + $0x1], 0  ;;  %s3219_s27 = smov 0   ;;  %s3221_s28 = smov 0  }
   0xf   :  { %s3223_s29 = smov 0   ;;  %s3225_s30 = smov 0  }
  0x10 LB: > { %3754 = sst [smem:[#allocation20_spill]] %s3142_s28  ;;  %s3240_s9 = sadd.s32 4294967295, %s3150_s30   ;;  %s3150_s30 = sphi %s3225_s30, %s3786_s30   ;;  %s3146_s29 = sphi %s3223_s29, %s3789_s29   ;;  %s3142_s28 = sphi %s3221_s28, %s3788_s28   ;;  %s3138_s27 = sphi %s3219_s27, %s3787_s27  }
  0x11   : > { %3755 = sst [smem:[#allocation21_spill]] %s3146_s29  ;;  %s3736_s10 = sadd.s32 4294967294, %s3150_s30  }
  0x12   : > { %p52_p0 = scmp.ne.s32.totalorder %s3142_s28, %s3138_s27  ;;  %p3735_p1 = scmp.eq.s32.totalorder %s3240_s9, 0 }
  0x13   : > { %p124_p3 = scmp.eq.s32.totalorder %s3736_s10, 1  ;;  %p2370_p5 = scmp.ge.s32.totalorder %s3150_s30, 1 }
  0x14   : > { %p3251_p4 = por %p3735_p1, %p52_p0  ;;  %p261_p7 = scmp.lt.s32.totalorder %s3150_s30, 3 }
  0x15   : > { %p3256_p6 = por %p124_p3, %p52_p0  ;;  %s3152_s14 = smov [#allocation5]  }
  0x16   : > { %s3756_s11 = scalar_select %p3251_p4, 1, 0 }
  0x17   : > { %s3757_s12 = scalar_select %p3256_p6, 1, 0 }
  0x18   : > { %p3261_p8 = pnand %p2370_p5, %p261_p7  ;;  %s273_s15 = sshll.u32 %s3152_s14, 4  ;;  %s274_s15 = int_to_ptr.vmem [resolvable:$true] %s273_s15 }
  0x19   : > { %s3153_s17 = smov [#allocation7]   ;;  %s2901_s19 = scalar_lea.vmem %s274_s15, 49152 }
  0x1a   : > { %s3758_s13 = scalar_select %p3261_p8, 1, 0 }
  0x1b   : > { %p2764_p9 = pneg %p3261_p8  ;;  %s287_s18 = sshll.u32 %s3153_s17, 4  ;;  %s288_s18 = int_to_ptr.vmem [resolvable:$true] %s287_s18 }
  0x1c   : > { %p2902_p13 = scmp.ne.s32.totalorder %s274_s15, %s2901_s19  ;;  %p2909_p5 = scmp.lt.s32.totalorder %s274_s15, %s274_s15 }
  0x1d   : > { %p3270_p11 = pnand %p2764_p9, %p3735_p1  ;;  %p2910_p7 = scmp.lt.s32.totalorder %s2901_s19, %s2901_s19 }
  0x1f   : > { %p2892_p12 = pneg %p3270_p11  ;;  %p2911_p10 = por %p2910_p7, %p2909_p5 }
  0x21   : > { %p2904_p0 = pnand %p2902_p13, %p2892_p12 }
  0x23   : > { %p2905_p3 = pneg %p2904_p0 }
  0x25   : > { %p2912_p9 = pnand %p2911_p10, %p2905_p3 }
  0x27   : > { %2915 = shalt.err (!%p2912_p9)
}
  0x28   : > { %s3154_s20 = smov 512   ;;  %s3155_s21 = smov 32  }
  0x29   : > { %s3760_s1 = sld [smem:[#allocation25_spill]]  ;;  %s2927_s24 = scalar_lea.vmem %s288_s18, 128 }
  0x2a   : > { %p2928_p1 = scmp.ne.s32.totalorder %s288_s18, %s2927_s24  ;;  %p2935_p2 = scmp.lt.s32.totalorder %s288_s18, %s288_s18 }
  0x2b   : > { %p2936_p6 = scmp.lt.s32.totalorder %s2927_s24, %s2927_s24 }
  0x2c   : > { %p2930_p13 = pnand %p2928_p1, %p2892_p12 }
  0x2d   : > { %p2937_p5 = por %p2936_p6, %p2935_p2 }
  0x2e   : > { %p2931_p0 = pneg %p2930_p13 }
  0x2f   : > { %2767 = dma.hbm_to_vmem [thread:$0]  (!%p3270_p11), %s3760_s1, 49152, %s274_s15, [#allocation6], %s3154_s20, %s3154_s20, %s3155_s21  }
  0x30   : > { %p2938_p10 = pnand %p2937_p5, %p2931_p0 }
  0x32   : > { %2941 = shalt.err (!%p2938_p10)
}
  0x33   : > { %s3761_s2 = sld [smem:[#allocation26_spill]]  ;;  %s3293_s14 = sadd.s32 1, %s3150_s30  }
  0x34   : > { %3762 = sst [smem:[#allocation22_spill]] %s3293_s14  ;;  %s39_s15 = sadd.s32 1, %s3146_s29 }
  0x35   : > { %s36_s16 = ssub.s32 %s3150_s30, %s3293_s14  ;;  %p46_p1 = scmp.ne.s32.totalorder %s3146_s29, %s3142_s28 }
  0x36   : > { %p37_p2 = scmp.eq.s32.totalorder %s36_s16, 0  ;;  %p47_p6 = scmp.eq.s32.totalorder %s3150_s30, 0 }
  0x37   : > { %p3763_p12 = scmp.eq.s32.totalorder %s3240_s9, 1  ;;  %p2793_p7 = scmp.lt.s32.totalorder %s3150_s30, 2 }
  0x38   : > { %s3309_s19 = scalar_select %p37_p2, %s3146_s29, %s39_s15  }
  0x39   : > { %2770 = dma.hbm_to_vmem [thread:$0]  (!%p3270_p11), %s3761_s2, 128, %s288_s18, [#allocation6]  }
  0x3a   : > { %p3303_p3 = por %p3763_p12, %p46_p1  ;;  %3765 = sst [smem:[#allocation23_spill]] %s3309_s19 }
  0x3b   : > { %p48_p9 = por %p47_p6, %p46_p1  ;;  %s298_s20 = sand.u32 1, %s3146_s29  }
  0x3c   : > { %s3764_s17 = scalar_select %p3303_p3, 1, 0 }
  0x3d   : > { %s2374_s21 = sshll.u32 %s298_s20, 4  ;;  %s2551_s18 = sshll.u32 %s3150_s30, 8 }
  0x3e   : > { %s3766_s0 = sld [smem:[#allocation24_spill]]  ;;  %s302_s25 = scalar_lea.vmem [#allocation2], %s2374_s21 }
  0x3f   : > { %s309_s26 = sshll.u32 %s302_s25, 4  ;;  %p3320_p11 = pnand %p2793_p7, %p48_p9  ;;  %s3318_s26 = int_to_ptr.vmem [resolvable:$true] %s309_s26 }
  0x40   : > { %s3324_s15 = scalar_lea.sflag [#allocation3], %s298_s20 }
  0x41   : > { %p2944_p0 = pneg %p3320_p11 }
  0x44   : > { %s3316_s24 = scalar_lea.hbm %s3766_s0, %s2551_s18  ;;  %s2947_s21 = scalar_lea.hbm %s3766_s0, 512 }
  0x45   : > { %s2942_s10 = scalar_lea.hbm %s3316_s24, 256  ;;  %p2948_p1 = scmp.lt.s32.totalorder %s3316_s24, %s3766_s0 }
  0x46   : > { %p2943_p13 = scmp.ne.s32.totalorder %s3316_s24, %s2942_s10  ;;  %p2949_p2 = scmp.lt.s32.totalorder %s2947_s21, %s2942_s10 }
  0x48   : > { %p2945_p5 = pnand %p2944_p0, %p2943_p13  ;;  %p2950_p6 = por %p2949_p2, %p2948_p1 }
  0x4a   : > { %p2946_p10 = pneg %p2945_p5 }
  0x4c   : > { %p2951_p12 = pnand %p2950_p6, %p2946_p10 }
  0x4e   : > { %2954 = shalt.err (!%p2951_p12)
}
  0x4f   : > { %s2955_s20 = scalar_lea.vmem %s3318_s26, 256  ;;  %s3156_s1 = smov [#allocation2]  }
  0x50   : > { %p2956_p7 = scmp.ne.s32.totalorder %s3318_s26, %s2955_s20  ;;  %s2960_s2 = sshll.u32 %s3156_s1, 4  ;;  %s2961_s2 = int_to_ptr.vmem [resolvable:$false] %s2960_s2 }
  0x51   : > { %s2962_s18 = scalar_lea.vmem %s2961_s2, 512  ;;  %p2963_p5 = scmp.lt.s32.totalorder %s3318_s26, %s2961_s2 }
  0x52   : > { %p2958_p9 = pnand %p2956_p7, %p2944_p0  ;;  %p2964_p3 = scmp.lt.s32.totalorder %s2962_s18, %s2955_s20 }
  0x54   : > { %p2959_p13 = pneg %p2958_p9  ;;  %p2965_p4 = por %p2964_p3, %p2963_p5 }
  0x56   : > { %p2966_p8 = pnand %p2965_p4, %p2959_p13 }
  0x58   : > { %2969 = shalt.err (!%p2966_p8)
}
  0x59   : > { %s3157_s10 = smov 128   ;;  %s3158_s22 = smov 8  }
  0x5a   : > { %2774 = dma.hbm_to_vmem [thread:$0]  (!%p3320_p11), %s3316_s24, 256, %s3318_s26, %s3324_s15, %s3157_s10, %s3157_s10, %s3158_s22  }
  0x5b   : > { %p3768_p0 = scmp.ne.s32.totalorder %s3758_s13, 0 }
  0x5c   : > { %s3348_s1 = sand.u32 (!%p3768_p0), 1, %s3142_s28   ;;  %p3769_p4 = scmp.ne.s32.totalorder (!%p3768_p0), %s3756_s11, 0 }
  0x5d   : > { %321 = sbr.rel (%p3768_p0) target bundleno = 2191 (0x88f), region = 32  ;;  %s3351_s2 = sshll.u32 (!%p3768_p0), %s3348_s1, 4 }
  0x5e   : > { %s324_s21 = scalar_lea.sflag (!%p3768_p0), [#allocation3], %s3348_s1  ;;  %s327_s23 = scalar_lea.vmem (!%p3768_p0), [#allocation2], %s3351_s2 }
  0x62   : > { %3117 = dma.done.wait (%p3769_p4), %s324_s21, 256  }
  0x63   : > { %3119 = vsyncadd (%p3769_p4), %s324_s21, 4294967040  ;;  %p3770_p8 = scmp.eq.s32.totalorder %s3240_s9, 0 }
  0x65   : > { %3121 = dma.done.wait (%p3770_p8), [#allocation6], 49280   ;;  %p3771_p3 = pmov %p3770_p8 }
  0x66   : > { %v3159_v0 = vmov 0.0   ;;  %vm3160_vm0 = vmmov 0   ;;  %vm403_vm1 = vcmask 1040384   ;;  %v399_v1 = vld [vmem:[%s327_s23] sm:$0xff]  ;;  %v400_v2 = vld [vmem:[%s327_s23 + $0x8] sm:$0xff]  ;;  %vm410_vm2 = vcmask 1046528  }
  0x67   : > { %3123 = vsyncadd (%p3771_p3), [#allocation6], 4294918016  ;;  %2676 = vmatprep.subr.bf16.mxu0 %v3159_v0  ;;  %2688 = vmatprep.mubr.msk.bf16.mxu0 %vm3160_vm0, %v3159_v0  ;;  %v446_v3 = vld [vmem:[#allocation5 + $0x140] sm:$0xf]  ;;  %v405_v4 = vrot.slane %v400_v2, 7  ;;  %v412_v5 = vrot.slane %v400_v2, 1  ;;  %v2845_v6 = vpack.i.bf16 %v400_v2, %v399_v1 }
  0x68   : > { %v404_v7 = vrot.slane %v399_v1, 7  ;;  %v447_v8 = vld [vmem:[#allocation5 + $0x160] sm:$0xf]  ;;  %v411_v9 = vrot.slane %v399_v1, 1  ;;  %s3161_s11 = smov 32   ;;  %s3162_s13 = smov 64   ;;  %vm3409_vm10 = vmneg %vm403_vm1 }
  0x69   : > { %v2394_v10 = vcombine.low %v446_v3, %v447_v8  ;;  %v444_v11 = vld [vmem:[#allocation5 + $0x100] sm:$0xf]  ;;  %2846 = vrot.lane.b32.xlu0 %v2845_v6, %s3161_s11  ;;  %v415_v13 = vsel %vm410_vm2, %v412_v5, 0.0  ;;  %vm429_vm3 = vcmask 261120   ;;  %vm432_vm4 = vcmask 523264   ;;  %v577_v42 = vld [vmem:[#allocation5 + $0x144] sm:$0xff] }
  0x6a   : > { %v445_v12 = vld [vmem:[#allocation5 + $0x120] sm:$0xf]  ;;  %v406_v14 = vsel %vm403_vm1, %v404_v7, %v405_v4  ;;  %v413_v15 = vsel %vm410_vm2, %v411_v9, %v412_v5  ;;  %v409_v33 = vsel %vm403_vm1, 0.0, %v404_v7  ;;  %vm491_vm5 = vcmask 785408   ;;  %v578_v43 = vld [vmem:[#allocation5 + $0x164] sm:$0xff]  ;;  %s2381_s24 = sshll.u32 %s3348_s1, 5 }
  0x6b   : > { %2677 = vmatpush3.bf16.msra.mxu0 %v2394_v10  ;;  %v2393_v16 = vcombine.low %v444_v11, %v445_v12  ;;  %v2850_v17 = vpack.i.bf16 %v415_v13, %v413_v15  ;;  %v442_v18 = vld [vmem:[#allocation5 + $0xc0] sm:$0xf]  ;;  %v575_v44 = vld [vmem:[#allocation5 + $0x104] sm:$0xff]  ;;  %v2407_v45 = vcombine.high %v577_v42, %v578_v43  ;;  %v2406_v46 = vcombine.low %v577_v42, %v578_v43  ;;  %v809_v10 = vld [vmem:[#allocation5 + $0x7cc] sm:$0xf]  ;;  %s3397_s26 = scalar_lea.vmem [#allocation8], %s2381_s24 }
  0x6c   : > { %2678 = vmatprep.subr.bf16.mxu0 %v3159_v0  ;;  %v443_v19 = vld [vmem:[#allocation5 + $0xe0] sm:$0xf]  ;;  %v576_v47 = vld [vmem:[#allocation5 + $0x124] sm:$0xff]  ;;  %v3163_v8 = vmov 0   ;;  %v810_v11 = vld [vmem:[#allocation5 + $0x7ec] sm:$0xf] }
  0x6d   : > { %2851 = vrot.lane.b32.xlu0 %v2850_v17, %s3162_s13  ;;  %v2392_v20 = vcombine.low %v442_v18, %v443_v19  ;;  %v440_v21 = vld [vmem:[#allocation5 + $0x80] sm:$0xf]  ;;  %v2405_v48 = vcombine.high %v575_v44, %v576_v47  ;;  %v573_v49 = vld [vmem:[#allocation5 + $0xc4] sm:$0xff]  ;;  %658 = vmatprep.subr.bf16.mxu1 %v2407_v45  ;;  %v2404_v51 = vcombine.low %v575_v44, %v576_v47  ;;  %v772_v42 = vld [vmem:[#allocation5 + $0x32c] sm:$0xf]  ;;  %vm3164_vm11 = vmmov 1  }
  0x6e   : > { %v441_v22 = vld [vmem:[#allocation5 + $0xa0] sm:$0xf]  ;;  %v574_v50 = vld [vmem:[#allocation5 + $0xe4] sm:$0xff]  ;;  %659 = vmatpush1.bf16.msra.mxu1 %v2406_v46  ;;  %686 = vmatprep.mubr.bf16.mxu1 %v3163_v8  ;;  %v2441_v15 = vcombine.low %v809_v10, %v810_v11  ;;  %v755_v43 = vld [vmem:[#allocation5 + $0x10c] sm:$0xf]  ;;  %vm1271_vm15 = vcmask 1041408  }
  0x6f   : > { %2679 = vmatpush3.bf16.msra.mxu0 %v2393_v16  ;;  %v2391_v23 = vcombine.low %v440_v21, %v441_v22  ;;  %v438_v24 = vld [vmem:[#allocation5 + $0x40] sm:$0xf]  ;;  %660 = vmatprep.subr.bf16.mxu1 %v2405_v48  ;;  %v2403_v52 = vcombine.high %v573_v49, %v574_v50  ;;  %v571_v53 = vld [vmem:[#allocation5 + $0x84] sm:$0xff]  ;;  %v2402_v55 = vcombine.low %v573_v49, %v574_v50  ;;  %v777_v16 = vld [vmem:[#allocation5 + $0x3cc] sm:$0xf]  ;;  %s3448_s16 = scalar_lea.vmem [#allocation9], %s3351_s2 }
  0x70   : > { %2680 = vmatprep.subr.bf16.mxu0 %v3159_v0  ;;  %v439_v25 = vld [vmem:[#allocation5 + $0x60] sm:$0xf]  ;;  %v572_v54 = vld [vmem:[#allocation5 + $0xa4] sm:$0xff]  ;;  %v761_v21 = vld [vmem:[#allocation5 + $0x1cc] sm:$0xf]  ;;  %s3471_s15 = scalar_lea.vmem [#allocation11], %s3351_s2 }
  0x71   : > { %v2390_v26 = vcombine.low %v438_v24, %v439_v25  ;;  %v436_v27 = vld [vmem:[#allocation5] sm:$0xf]  ;;  %v2401_v56 = vcombine.high %v571_v53, %v572_v54  ;;  %v2400_v57 = vcombine.low %v571_v53, %v572_v54  ;;  %v569_v58 = vld [vmem:[#allocation5 + $0x44] sm:$0xff]  ;;  %v756_v45 = vld [vmem:[#allocation5 + $0x12c] sm:$0xf]  ;;  %s3489_s25 = scalar_lea.vmem [#allocation12], %s3351_s2 }
  0x72   : > { %v437_v28 = vld [vmem:[#allocation5 + $0x20] sm:$0xf]  ;;  %661 = vmatpush1.bf16.msra.mxu1 %v2404_v51  ;;  %v570_v59 = vld [vmem:[#allocation5 + $0x64] sm:$0xff]  ;;  %v2414_v46 = vcombine.low %v755_v43, %v756_v45  ;;  %v793_v51 = vld [vmem:[#allocation5 + $0x5cc] sm:$0xf]  ;;  %s3512_s20 = scalar_lea.vmem [#allocation14], %s3351_s2 }
  0x73   : > { %2681 = vmatpush3.bf16.msra.mxu0 %v2392_v20  ;;  %v2389_v29 = vcombine.low %v436_v27, %v437_v28  ;;  %662 = vmatprep.subr.bf16.mxu1 %v2403_v52  ;;  %v2399_v60 = vcombine.high %v569_v58, %v570_v59  ;;  %v2398_v61 = vcombine.low %v569_v58, %v570_v59  ;;  %v567_v62 = vld [vmem:[#allocation5 + $0x4] sm:$0xff]  ;;  %v2388_v1 = vld [vmem:[#allocation7] ss:$0 sm:$0xff]  ;;  %v778_v20 = vld [vmem:[#allocation5 + $0x3ec] sm:$0xf]  ;;  %s2063_s18 = sshll.u32 %s3397_s26, 4  ;;  %s3532_s18 = int_to_ptr.vmem [resolvable:$true] %s2063_s18 }
  0x74   : > { %2682 = vmatprep.subr.bf16.mxu0 %v3159_v0  ;;  %v568_v63 = vld [vmem:[#allocation5 + $0x24] sm:$0xff]  ;;  %v2425_v22 = vcombine.low %v777_v16, %v778_v20  ;;  %v794_v52 = vld [vmem:[#allocation5 + $0x5ec] sm:$0xf]  ;;  %vm2459_vm12 = vmpackc.low %vm3164_vm11, %vm3409_vm10  ;;  %s2095_s10 = sshll.u32 %s3471_s15, 4  ;;  %s2127_s22 = sshll.u32 %s3512_s20, 4  ;;  %s3535_s10 = int_to_ptr.vmem [resolvable:$true] %s2095_s10  ;;  %s3538_s22 = int_to_ptr.vmem [resolvable:$true] %s2127_s22 }
  0x75   : > { %v2397_v2 = vcombine.high %v567_v62, %v568_v63  ;;  %v2396_v4 = vcombine.low %v567_v62, %v568_v63  ;;  %v2433_v62 = vcombine.low %v793_v51, %v794_v52  ;;  %v790_v10 = vld [vmem:[#allocation5 + $0x56c] sm:$0xf]  ;;  %vm3424_vm13 = vmpackc.low %vm410_vm2, %vm3164_vm11  ;;  %s2079_s2 = sshll.u32 %s3448_s16, 4  ;;  %s3740_s23 = sand.u32 1, %s3240_s9   ;;  %s3550_s2 = int_to_ptr.vmem [resolvable:$true] %s2079_s2 }
  0x76   : > { %663 = vmatpush1.bf16.msra.mxu1 %v2402_v55  ;;  %v803_v11 = vld [vmem:[#allocation5 + $0x70c] sm:$0xf]  ;;  %s3776_s4 = sld [smem:[#allocation27_spill]]  ;;  %p3777_p10 = scmp.ne.s32.totalorder %s3764_s17, 0 }
  0x77   : > { %2683 = vmatpush3.bf16.msra.mxu0 %v2391_v23  ;;  %664 = vmatprep.subr.bf16.mxu1 %v2401_v56  ;;  %v762_v23 = vld [vmem:[#allocation5 + $0x1ec] sm:$0xf] }
  0x78   : > { %2684 = vmatprep.subr.bf16.mxu0 %v3159_v0  ;;  %v2417_v27 = vcombine.low %v761_v21, %v762_v23  ;;  %v807_v56 = vld [vmem:[#allocation5 + $0x78c] sm:$0xf] }
  0x79   : > { %v788_v16 = vld [vmem:[#allocation5 + $0x52c] sm:$0xf] }
  0x7a   : > { %665 = vmatpush1.bf16.msra.mxu1 %v2400_v57  ;;  %v808_v57 = vld [vmem:[#allocation5 + $0x7ac] sm:$0xf] }
  0x7b   : > { %2685 = vmatpush3.bf16.msra.mxu0 %v2390_v26  ;;  %666 = vmatprep.subr.bf16.mxu1 %v2399_v60  ;;  %v785_v21 = vld [vmem:[#allocation5 + $0x4cc] sm:$0xf] }
  0x7c   : > { %2686 = vmatprep.subr.bf16.mxu0 %v3159_v0  ;;  %v798_v43 = vld [vmem:[#allocation5 + $0x66c] sm:$0xf] }
  0x7d   : > { %v781_v45 = vld [vmem:[#allocation5 + $0x44c] sm:$0xf] }
  0x7e   : > { %667 = vmatpush1.bf16.msra.mxu1 %v2398_v61  ;;  %v749_v51 = vld [vmem:[#allocation5 + $0x4c] sm:$0xf] }
  0x7f   : > { %2687 = vmatpush3.bf16.msra.mxu0 %v2389_v29  ;;  %668 = vmatprep.subr.bf16.mxu1 %v2397_v2  ;;  %v775_v29 = vld [vmem:[#allocation5 + $0x38c] sm:$0xf] }
  0x80   : > { %2565 = vmatprep.subr.bf16.mxu0 %v2425_v22  ;;  %v791_v2 = vld [vmem:[#allocation5 + $0x58c] sm:$0xf] }
  0x81   : > { %v786_v22 = vld [vmem:[#allocation5 + $0x4ec] sm:$0xf] }
  0x82   : > { %669 = vmatpush1.bf16.msra.mxu1 %v2396_v4  ;;  %v805_v4 = vld [vmem:[#allocation5 + $0x74c] sm:$0xf]  ;;  %v2429_v23 = vcombine.low %v785_v21, %v786_v22 }
  0x83   : > { %2587 = vmatprep.subr.bf16.mxu1 %v2441_v15  ;;  %v787_v15 = vld [vmem:[#allocation5 + $0x50c] sm:$0xf] }
  0x84   : > { %v750_v52 = vld [vmem:[#allocation5 + $0x6c] sm:$0xf] }
  0xdb   : > { %v2847_v30 = vpop.permute.xlu0 %2846 }
  0xdc   : > { %v2849_v31 = vunpack.i.h.bf16 %v2847_v30  ;;  %v2848_v32 = vunpack.i.l.bf16 %v2847_v30  ;;  %v776_v30 = vld [vmem:[#allocation5 + $0x3ac] sm:$0xf] }
  0xde   : > { %v430_v37 = vsel %vm429_vm3, %v409_v33, %v2848_v32  ;;  %v431_v38 = vsel %vm429_vm3, %v406_v14, %v2849_v31  ;;  %v759_v31 = vld [vmem:[#allocation5 + $0x18c] sm:$0xf]  ;;  %v2424_v32 = vcombine.low %v775_v29, %v776_v30 }
  0xdf   : > { %v2852_v34 = vpop.permute.xlu0 %2851  ;;  %v760_v33 = vld [vmem:[#allocation5 + $0x1ac] sm:$0xf] }
  0xe0   : > { %v2854_v35 = vunpack.i.h.bf16 %v2852_v34  ;;  %v2853_v36 = vunpack.i.l.bf16 %v2852_v34  ;;  %v2416_v34 = vcombine.low %v759_v31, %v760_v33  ;;  %v799_v30 = vld [vmem:[#allocation5 + $0x68c] sm:$0xf] }
  0xe1   : > { %v800_v31 = vld [vmem:[#allocation5 + $0x6ac] sm:$0xf] }
  0xe2   : > { %v433_v39 = vsel %vm432_vm4, %v430_v37, %v2853_v36  ;;  %v434_v40 = vsel %vm432_vm4, %v431_v38, %v2854_v35  ;;  %v773_v35 = vld [vmem:[#allocation5 + $0x34c] sm:$0xf] }
  0xe3   : > { %v435_v41 = vpack.c.bf16 %v434_v40, %v433_v39  ;;  %v774_v36 = vld [vmem:[#allocation5 + $0x36c] sm:$0xf] }
  0xe4   : > { %v757_v37 = vld [vmem:[#allocation5 + $0x14c] sm:$0xf]  ;;  %v2423_v38 = vcombine.low %v773_v35, %v774_v36 }
  0xe5   : > { %2689 = vmatmul.mubr.msk.bf16.vlgmr.msra.gmra.mxu0 %vm491_vm5, %v435_v41  ;;  %v758_v39 = vld [vmem:[#allocation5 + $0x16c] sm:$0xf] }
  0xe6   : > { %2566 = vmatpush3.bf16.msra.mxu0 %v2417_v27  ;;  %v2415_v40 = vcombine.low %v757_v37, %v758_v39  ;;  %v771_v41 = vld [vmem:[#allocation5 + $0x30c] sm:$0xf] }
  0xe7   : > { %2567 = vmatprep.subr.bf16.mxu0 %v2424_v32  ;;  %v2422_v44 = vcombine.low %v771_v41, %v772_v42  ;;  %v753_v27 = vld [vmem:[#allocation5 + $0xcc] sm:$0xf]  ;;  %v2436_v32 = vcombine.low %v799_v30, %v800_v31 }
  0xe8   : > { %v783_v33 = vld [vmem:[#allocation5 + $0x48c] sm:$0xf] }
  0xe9   : > { %v767_v36 = vld [vmem:[#allocation5 + $0x28c] sm:$0xf] }
  0xea   : > { %2568 = vmatpush3.bf16.msra.mxu0 %v2416_v34  ;;  %v784_v34 = vld [vmem:[#allocation5 + $0x4ac] sm:$0xf] }
  0xeb   : > { %2569 = vmatprep.subr.bf16.mxu0 %v2423_v38  ;;  %v2428_v35 = vcombine.low %v783_v33, %v784_v34  ;;  %v768_v37 = vld [vmem:[#allocation5 + $0x2ac] sm:$0xf] }
  0xec   : > { %v2420_v38 = vcombine.low %v767_v36, %v768_v37  ;;  %v751_v39 = vld [vmem:[#allocation5 + $0x8c] sm:$0xf] }
  0xed   : > { %v797_v42 = vld [vmem:[#allocation5 + $0x64c] sm:$0xf] }
  0xee   : > { %2570 = vmatpush3.bf16.msra.mxu0 %v2415_v40  ;;  %v752_v40 = vld [vmem:[#allocation5 + $0xac] sm:$0xf] }
  0xef   : > { %2571 = vmatprep.subr.bf16.mxu0 %v2422_v44  ;;  %v2412_v41 = vcombine.low %v751_v39, %v752_v40  ;;  %v2435_v44 = vcombine.low %v797_v42, %v798_v43  ;;  %v825_v34 = vld [vmem:[#allocation5 + $0x9cc] sm:$0xf] }
  0xf0   : > { %v826_v39 = vld [vmem:[#allocation5 + $0x9ec] sm:$0xf] }
  0xf1   : > { %v839_v42 = vld [vmem:[#allocation5 + $0xb8c] sm:$0xf] }
  0xf2   : > { %2572 = vmatpush3.bf16.msra.mxu0 %v2414_v46  ;;  %v782_v46 = vld [vmem:[#allocation5 + $0x46c] sm:$0xf] }
  0xf3   : > { %v840_v43 = vld [vmem:[#allocation5 + $0xbac] sm:$0xf] }
 0x1a5   : > { %v529_v3 = vpop.f32.mrf.mxu0 }
 0x1a6   : > { %v530_v5 = vadd.f32 %v2388_v1, %v529_v3  ;;  %v792_v3 = vld [vmem:[#allocation5 + $0x5ac] sm:$0xf] }
 0x1a7   : > { %v2690_v6 = vpop.f32.mrf.mxu0 }
 0x1a8   : > { %v538_v12 = vrot.slane %v530_v5, 7  ;;  %v544_v13 = vrot.slane %v530_v5, 1  ;;  %v2432_v6 = vcombine.low %v791_v2, %v792_v3  ;;  %v841_v3 = vld [vmem:[#allocation5 + $0xbcc] sm:$0xf] }
 0x1a9   : > { %v532_v7 = vpop.f32.mrf.mxu0 }
 0x1aa   : > { %v533_v9 = vadd.f32 %v2388_v1, %v532_v7  ;;  %v543_v53 = vsel %vm403_vm1, 0.0, %v538_v12  ;;  %v2440_v1 = vcombine.low %v807_v56, %v808_v57  ;;  %v779_v57 = vld [vmem:[#allocation5 + $0x40c] sm:$0xf] }
 0x1ab   : > { %v2691_v14 = vpop.f32.mrf.mxu0 }
 0x1ac   : > { %v539_v17 = vrot.slane %v533_v9, 7  ;;  %v545_v18 = vrot.slane %v533_v9, 1  ;;  %v2855_v19 = vpack.i.bf16 %v533_v9, %v530_v5  ;;  %v806_v5 = vld [vmem:[#allocation5 + $0x76c] sm:$0xf] }
 0x1ad   : > { %v2439_v7 = vcombine.low %v805_v4, %v806_v5  ;;  %v789_v9 = vld [vmem:[#allocation5 + $0x54c] sm:$0xf] }
 0x1ae   : > { %2856 = vrot.lane.b32.xlu1 %v2855_v19, %s3161_s11  ;;  %v546_v24 = vsel %vm410_vm2, %v544_v13, %v545_v18  ;;  %v548_v25 = vsel %vm410_vm2, %v545_v18, 0.0  ;;  %v540_v26 = vsel %vm403_vm1, %v538_v12, %v539_v17  ;;  %v804_v12 = vld [vmem:[#allocation5 + $0x72c] sm:$0xf]  ;;  %v2431_v13 = vcombine.low %v789_v9, %v790_v10  ;;  %v579_v10 = vld [vmem:[#allocation7 + $0x1] sm:$0x3] }
 0x1af   : > { %v2860_v28 = vpack.i.bf16 %v548_v25, %v546_v24  ;;  %v2438_v14 = vcombine.low %v803_v11, %v804_v12  ;;  %v801_v17 = vld [vmem:[#allocation5 + $0x6cc] sm:$0xf]  ;;  %v2430_v19 = vcombine.low %v787_v15, %v788_v16 }
 0x1b0   : > { %v802_v18 = vld [vmem:[#allocation5 + $0x6ec] sm:$0xf] }
 0x1b1   : > { %v2437_v20 = vcombine.low %v801_v17, %v802_v18  ;;  %v769_v24 = vld [vmem:[#allocation5 + $0x2cc] sm:$0xf] }
 0x1b2   : > { %2861 = vrot.lane.b32.xlu1 %v2860_v28, %s3162_s13  ;;  %v770_v25 = vld [vmem:[#allocation5 + $0x2ec] sm:$0xf] }
 0x1b3   : > { %v754_v28 = vld [vmem:[#allocation5 + $0xec] sm:$0xf] }
 0x1b4   : > { %v2413_v29 = vcombine.low %v753_v27, %v754_v28  ;;  %v842_v4 = vld [vmem:[#allocation5 + $0xbec] sm:$0xf] }
 0x1b5   : > { %v2457_v5 = vcombine.low %v841_v3, %v842_v4  ;;  %v833_v3 = vld [vmem:[#allocation5 + $0xacc] sm:$0xf] }
 0x1b6   : > { %v834_v4 = vld [vmem:[#allocation5 + $0xaec] sm:$0xf] }
 0x220   : > { %v2857_v47 = vpop.permute.xlu1 %2856 }
 0x221   : > { %v2859_v48 = vunpack.i.h.bf16 %v2857_v47  ;;  %v2858_v49 = vunpack.i.l.bf16 %v2857_v47  ;;  %v2427_v47 = vcombine.low %v781_v45, %v782_v46 }
 0x223   : > { %v562_v58 = vsel %vm429_vm3, %v543_v53, %v2858_v49  ;;  %v563_v59 = vsel %vm429_vm3, %v540_v26, %v2859_v48  ;;  %v2421_v26 = vcombine.low %v769_v24, %v770_v25  ;;  %v765_v48 = vld [vmem:[#allocation5 + $0x24c] sm:$0xf]  ;;  %v2411_v53 = vcombine.low %v749_v51, %v750_v52 }
 0x224   : > { %v2862_v50 = vpop.permute.xlu1 %2861  ;;  %v766_v49 = vld [vmem:[#allocation5 + $0x26c] sm:$0xf] }
 0x225   : > { %v2864_v54 = vunpack.i.h.bf16 %v2862_v50  ;;  %v2863_v55 = vunpack.i.l.bf16 %v2862_v50  ;;  %2573 = vmatprep.subr.bf16.mxu0 %v2421_v26  ;;  %v2419_v50 = vcombine.low %v765_v48, %v766_v49  ;;  %v823_v51 = vld [vmem:[#allocation5 + $0x98c] sm:$0xf] }
 0x226   : > { %2574 = vmatpush3.bf16.msra.mxu0 %v2413_v29  ;;  %v824_v52 = vld [vmem:[#allocation5 + $0x9ac] sm:$0xf] }
 0x227   : > { %v564_v60 = vsel %vm432_vm4, %v562_v58, %v2863_v55  ;;  %v565_v61 = vsel %vm432_vm4, %v563_v59, %v2864_v54  ;;  %2575 = vmatprep.subr.bf16.mxu0 %v2420_v38  ;;  %v795_v54 = vld [vmem:[#allocation5 + $0x60c] sm:$0xf] }
 0x228   : > { %v566_v63 = vpack.c.bf16 %v565_v61, %v564_v60  ;;  %v796_v55 = vld [vmem:[#allocation5 + $0x62c] sm:$0xf] }
 0x229   : > { %v2434_v56 = vcombine.low %v795_v54, %v796_v55  ;;  %v780_v58 = vld [vmem:[#allocation5 + $0x42c] sm:$0xf] }
 0x22a   : > { %2408 = vmatmul.mubr.msk.bf16.vlgmr.msra.gmra.mxu1 %vm491_vm5, %v566_v63  ;;  %2576 = vmatpush3.bf16.msra.mxu0 %v2412_v41  ;;  %v2426_v59 = vcombine.low %v779_v57, %v780_v58  ;;  %v763_v60 = vld [vmem:[#allocation5 + $0x20c] sm:$0xf] }
 0x22b   : > { %2588 = vmatpush3.bf16.msra.mxu1 %v2433_v62  ;;  %2577 = vmatprep.subr.bf16.mxu0 %v2419_v50  ;;  %v764_v61 = vld [vmem:[#allocation5 + $0x22c] sm:$0xf]  ;;  %v2456_v50 = vcombine.low %v839_v42, %v840_v43  ;;  %v1316_v42 = vld [vmem:[#allocation5 + $0x390] sm:$0xf] }
 0x22c   : > { %2589 = vmatprep.subr.bf16.mxu1 %v2440_v1  ;;  %v2418_v62 = vcombine.low %v763_v60, %v764_v61  ;;  %v747_v63 = vld [vmem:[#allocation5 + $0xc] sm:$0xf]  ;;  %v1317_v43 = vld [vmem:[#allocation5 + $0x3b0] sm:$0xf] }
 0x22d   : > { %v748_v1 = vld [vmem:[#allocation5 + $0x2c] sm:$0xf] }
 0x22e   : > { %2578 = vmatpush3.bf16.msra.mxu0 %v2411_v53  ;;  %v2410_v2 = vcombine.low %v747_v63, %v748_v1  ;;  %v837_v54 = vld [vmem:[#allocation5 + $0xb4c] sm:$0xf] }
 0x22f   : > { %2590 = vmatpush3.bf16.msra.mxu1 %v2432_v6  ;;  %2579 = vmatprep.subr.bf16.mxu0 %v2418_v62  ;;  %v581_v6 = vlaneseq  ;;  %v838_v55 = vld [vmem:[#allocation5 + $0xb6c] sm:$0xf] }
 0x230   : > { %2591 = vmatprep.subr.bf16.mxu1 %v2439_v7  ;;  %v2455_v57 = vcombine.low %v837_v54, %v838_v55  ;;  %v821_v58 = vld [vmem:[#allocation5 + $0x94c] sm:$0xf]  ;;  %v1299_v55 = vld [vmem:[#allocation5 + $0x170] sm:$0xf] }
 0x231   : > { %v582_v7 = vshrl.u32 %v581_v6, 7  ;;  %v835_v60 = vld [vmem:[#allocation5 + $0xb0c] sm:$0xf]  ;;  %v2453_v6 = vcombine.low %v833_v3, %v834_v4  ;;  %v1329_v4 = vld [vmem:[#allocation5 + $0x530] sm:$0xf] }
 0x232   : > { %2580 = vmatpush3.bf16.msra.mxu0 %v2410_v2  ;;  %v836_v61 = vld [vmem:[#allocation5 + $0xb2c] sm:$0xf] }
 0x233   : > { %2592 = vmatpush3.bf16.msra.mxu1 %v2431_v13  ;;  %2609 = vmatprep.subr.bf16.mxu0 %v2457_v5  ;;  %v583_v9 = vsub.s32 0, %v582_v7  ;;  %v587_v11 = vsub.s32 1, %v582_v7  ;;  %v2454_v63 = vcombine.low %v835_v60, %v836_v61  ;;  %v819_v1 = vld [vmem:[#allocation5 + $0x90c] sm:$0xf] }
 0x234   : > { %2593 = vmatprep.subr.bf16.mxu1 %v2438_v14  ;;  %v820_v2 = vld [vmem:[#allocation5 + $0x92c] sm:$0xf] }
 0x235   : > { %v584_v12 = vrot.slane %v579_v10, %v583_v9  ;;  %v588_v13 = vrot.slane %v579_v10, %v587_v11  ;;  %v2446_v5 = vcombine.low %v819_v1, %v820_v2  ;;  %v817_v7 = vld [vmem:[#allocation5 + $0x8cc] sm:$0xf]  ;;  %v1297_v1 = vld [vmem:[#allocation5 + $0x130] sm:$0xf] }
 0x236   : > { %v818_v9 = vld [vmem:[#allocation5 + $0x8ec] sm:$0xf]  ;;  %v1328_v2 = vld [vmem:[#allocation5 + $0x510] sm:$0xf] }
 0x237   : > { %2594 = vmatpush3.bf16.msra.mxu1 %v2430_v19  ;;  %v831_v10 = vld [vmem:[#allocation5 + $0xa8c] sm:$0xf] }
 0x238   : > { %2595 = vmatprep.subr.bf16.mxu1 %v2437_v20  ;;  %v832_v11 = vld [vmem:[#allocation5 + $0xaac] sm:$0xf] }
 0x23b   : > { %2596 = vmatpush3.bf16.msra.mxu1 %v2429_v23 }
 0x23c   : > { %2597 = vmatprep.subr.bf16.mxu1 %v2436_v32 }
 0x23f   : > { %2598 = vmatpush3.bf16.msra.mxu1 %v2428_v35 }
 0x240   : > { %2599 = vmatprep.subr.bf16.mxu1 %v2435_v44 }
 0x243   : > { %2600 = vmatpush3.bf16.msra.mxu1 %v2427_v47  ;;  %v2449_v47 = vcombine.low %v825_v34, %v826_v39  ;;  %v1335_v39 = vld [vmem:[#allocation5 + $0x5f0] sm:$0xf] }
 0x244   : > { %2601 = vmatprep.subr.bf16.mxu1 %v2434_v56  ;;  %v2448_v56 = vcombine.low %v823_v51, %v824_v52  ;;  %v1314_v51 = vld [vmem:[#allocation5 + $0x350] sm:$0xf] }
 0x245   : > { %v1315_v52 = vld [vmem:[#allocation5 + $0x370] sm:$0xf] }
 0x246   : > { %v2486_v54 = vcombine.low %v1314_v51, %v1315_v52 }
 0x247   : > { %2602 = vmatpush3.bf16.msra.mxu1 %v2426_v59  ;;  %v822_v59 = vld [vmem:[#allocation5 + $0x96c] sm:$0xf] }
 0x248   : > { %v2447_v62 = vcombine.low %v821_v58, %v822_v59  ;;  %v1312_v58 = vld [vmem:[#allocation5 + $0x310] sm:$0xf] }
 0x249   : > { %v1313_v59 = vld [vmem:[#allocation5 + $0x330] sm:$0xf] }
 0x2ea   : > { %v688_v14 = vpop.f32.mrf.mxu1 }
 0x2eb   : > { %v689_v15 = vadd.f32 %v688_v14, %v584_v12  ;;  %v815_v14 = vld [vmem:[#allocation5 + $0x88c] sm:$0xf] }
 0x2ec   : > { %v690_v16 = vpop.f32.mrf.mxu1 }
 0x2ed   : > { %vm697_vm6 = vcmp.ge.f32.partialorder %v689_v15, 0.0  ;;  %v701_v17 = vmul.f32 0.1, %v689_v15  ;;  %v691_v18 = vadd.f32 %v690_v16, %v588_v13  ;;  %v829_v16 = vld [vmem:[#allocation5 + $0xa4c] sm:$0xf] }
 0x2ee   : > { %v692_v19 = vpop.f32.mrf.mxu1 }
 0x2ef   : > { %v3395_v20 = vsel %vm697_vm6, %v689_v15, %v701_v17  ;;  %vm698_vm7 = vcmp.ge.f32.partialorder %v691_v18, 0.0  ;;  %v702_v21 = vmul.f32 0.1, %v691_v18  ;;  %v693_v22 = vadd.f32 %v692_v19, %v584_v12  ;;  %v816_v15 = vld [vmem:[#allocation5 + $0x8ac] sm:$0xf] }
 0x2f0   : > { %709 = vst [vmem:[%s3397_s26] sm:$0xff] %v3395_v20  ;;  %v694_v23 = vpop.f32.mrf.mxu1  ;;  %v717_v30 = vrot.slane %v3395_v20, 7  ;;  %v2445_v12 = vcombine.low %v817_v7, %v818_v9  ;;  %v830_v17 = vld [vmem:[#allocation5 + $0xa6c] sm:$0xf]  ;;  %v1311_v7 = vld [vmem:[#allocation5 + $0x2f0] sm:$0xf] }
 0x2f1   : > { %v706_v24 = vsel %vm698_vm7, %v691_v18, %v702_v21  ;;  %vm699_vm8 = vcmp.ge.f32.partialorder %v693_v22, 0.0  ;;  %v703_v25 = vmul.f32 0.1, %v693_v22  ;;  %v695_v26 = vadd.f32 %v694_v23, %v588_v13  ;;  %v813_v21 = vld [vmem:[#allocation5 + $0x84c] sm:$0xf]  ;;  %vm2497_vm7 = vmneg %vm1271_vm15 }
 0x2f2   : > { %710 = vst [vmem:[%s3397_s26 + $0x8] sm:$0xff] %v706_v24  ;;  %v718_v31 = vrot.slane %v706_v24, 7  ;;  %v732_v35 = vrot.slane %v706_v24, 1  ;;  %v2452_v13 = vcombine.low %v831_v10, %v832_v11  ;;  %v2444_v18 = vcombine.low %v815_v14, %v816_v15  ;;  %v827_v23 = vld [vmem:[#allocation5 + $0xa0c] sm:$0xf] }
 0x2f3   : > { %v3402_v27 = vsel %vm699_vm8, %v693_v22, %v703_v25  ;;  %vm700_vm9 = vcmp.ge.f32.partialorder %v695_v26, 0.0  ;;  %v704_v28 = vmul.f32 0.1, %v695_v26  ;;  %v2451_v19 = vcombine.low %v829_v16, %v830_v17  ;;  %v814_v22 = vld [vmem:[#allocation5 + $0x86c] sm:$0xf] }
 0x2f4   : > { %711 = vst [vmem:[%s3397_s26 + $0x10] sm:$0xff] %v3402_v27  ;;  %v719_v29 = vrot.slane %v3402_v27, 7  ;;  %v743_v40 = vpack.c.bf16 %v3402_v27, %v3395_v20  ;;  %v2443_v25 = vcombine.low %v813_v21, %v814_v22  ;;  %v1294_v10 = vld [vmem:[#allocation5 + $0xd0] sm:$0xf]  ;;  %vm1278_vm8 = vcmask 1045504  }
 0x2f5   : > { %v708_v32 = vsel %vm700_vm9, %v695_v26, %v704_v28  ;;  %v811_v28 = vld [vmem:[#allocation5 + $0x80c] sm:$0xf]  ;;  %v1295_v11 = vld [vmem:[#allocation5 + $0xf0] sm:$0xf]  ;;  %vm2498_vm9 = vmpackc.low %vm3164_vm11, %vm2497_vm7 }
 0x2f6   : > { %712 = vst [vmem:[%s3397_s26 + $0x18] sm:$0xff] %v708_v32  ;;  %v721_v36 = vrot.slane %v708_v32, 7  ;;  %v733_v37 = vrot.slane %v708_v32, 1  ;;  %v744_v38 = vpack.c.bf16 %v708_v32, %v706_v24  ;;  %v720_v41 = vsel %vm403_vm1, %v717_v30, %v719_v29  ;;  %v828_v24 = vld [vmem:[#allocation5 + $0xa2c] sm:$0xf]  ;;  %vm2501_vm10 = vmpackc.low %vm1278_vm8, %vm3164_vm11  ;;  %s3554_s26 = scalar_lea.sflag [#allocation10], %s3740_s23 }
 0x2f7   : > { %v2464_v48 = vpack.c.bf16 %v720_v41, %v717_v30  ;;  %v2450_v26 = vcombine.low %v827_v23, %v828_v24  ;;  %v812_v29 = vld [vmem:[#allocation5 + $0x82c] sm:$0xf]  ;;  %v730_v30 = vrot.slane %v3402_v27, 1  ;;  %v1302_v27 = vld [vmem:[#allocation5 + $0x1d0] sm:$0xf] }
 0x2f8   : > { %1211 = vmatprep.mubr.bf16.mxu1 %v744_v38  ;;  %v722_v44 = vsel %vm403_vm1, %v718_v31, %v721_v36  ;;  %v734_v45 = vsel %vm410_vm2, %v732_v35, %v733_v37  ;;  %v2442_v32 = vcombine.low %v811_v28, %v812_v29  ;;  %v1318_v35 = vld [vmem:[#allocation5 + $0x3d0] sm:$0xf] }
 0x2f9   : > { %1212 = vmatmul.mubr.bf16.vlgmr.msra.gmra.mxu1 %v743_v40  ;;  %v2460_v46 = vpack.c.bf16 %v722_v44, %v718_v31  ;;  %v2467_v53 = vpack.c.bf16 %v733_v37, %v734_v45  ;;  %v729_v31 = vrot.slane %v3395_v20, 1  ;;  %v1319_v36 = vld [vmem:[#allocation5 + $0x3f0] sm:$0xf]  ;;  %v2487_v45 = vcombine.low %v1316_v42, %v1317_v43 }
 0x2fa   : > { %v2488_v37 = vcombine.low %v1318_v35, %v1319_v36  ;;  %v1303_v20 = vld [vmem:[#allocation5 + $0x1f0] sm:$0xf] }
 0x2fb   : > { %2461 = vmatprep.mubr.msk.bf16.mxu0 %vm2459_vm12, %v2460_v46  ;;  %v731_v33 = vsel %vm410_vm2, %v729_v31, %v730_v30  ;;  %v1334_v38 = vld [vmem:[#allocation5 + $0x5d0] sm:$0xf]  ;;  %v2480_v40 = vcombine.low %v1302_v27, %v1303_v20 }
 0x2fc   : > { %2465 = vmatmul.mubr.msk.bf16.vlgmr.msra.gmra.mxu0 %vm2459_vm12, %v2464_v48  ;;  %v2470_v34 = vpack.c.bf16 %v730_v30, %v731_v33  ;;  %v2496_v41 = vcombine.low %v1334_v38, %v1335_v39  ;;  %v1300_v44 = vld [vmem:[#allocation5 + $0x190] sm:$0xf]  ;;  %2631 = vmatprep.subr.bf16.mxu1 %v2488_v37  ;;  %vm1579_vm12 = vcmask 1043456  }
 0x2fd   : > { %2610 = vmatpush3.bf16.msra.mxu0 %v2449_v47  ;;  %2468 = vmatprep.mubr.msk.bf16.mxu0 %vm3424_vm13, %v2467_v53  ;;  %v1301_v46 = vld [vmem:[#allocation5 + $0x1b0] sm:$0xf] }
 0x2fe   : > { %2611 = vmatprep.subr.bf16.mxu0 %v2456_v50  ;;  %v1332_v47 = vld [vmem:[#allocation5 + $0x590] sm:$0xf]  ;;  %2632 = vmatpush3.bf16.msra.mxu1 %v2480_v40  ;;  %v2479_v49 = vcombine.low %v1300_v44, %v1301_v46 }
 0x2ff   : > { %v1333_v48 = vld [vmem:[#allocation5 + $0x5b0] sm:$0xf]  ;;  %2633 = vmatprep.subr.bf16.mxu1 %v2487_v45 }
 0x300   : > { %v2495_v50 = vcombine.low %v1332_v47, %v1333_v48  ;;  %v1298_v53 = vld [vmem:[#allocation5 + $0x150] sm:$0xf] }
 0x301   : > { %2612 = vmatpush3.bf16.msra.mxu0 %v2448_v56  ;;  %v1330_v56 = vld [vmem:[#allocation5 + $0x550] sm:$0xf]  ;;  %v2478_v60 = vcombine.low %v1298_v53, %v1299_v55 }
 0x302   : > { %2613 = vmatprep.subr.bf16.mxu0 %v2455_v57  ;;  %v1331_v57 = vld [vmem:[#allocation5 + $0x570] sm:$0xf]  ;;  %2634 = vmatpush3.bf16.msra.mxu1 %v2479_v49  ;;  %v2409_v49 = vld [vmem:[#allocation7 + $0x3] ss:$0 sm:$0xff] }
 0x303   : > { %v2494_v61 = vcombine.low %v1330_v56, %v1331_v57  ;;  %2635 = vmatprep.subr.bf16.mxu1 %v2486_v54  ;;  %v1327_v14 = vld [vmem:[#allocation5 + $0x4f0] sm:$0xf] }
 0x304   : > { %v1308_v16 = vld [vmem:[#allocation5 + $0x290] sm:$0xf] }
 0x305   : > { %2614 = vmatpush3.bf16.msra.mxu0 %v2447_v62  ;;  %v2485_v62 = vcombine.low %v1312_v58, %v1313_v59  ;;  %v1309_v17 = vld [vmem:[#allocation5 + $0x2b0] sm:$0xf] }
 0x306   : > { %2615 = vmatprep.subr.bf16.mxu0 %v2454_v63  ;;  %2636 = vmatpush3.bf16.msra.mxu1 %v2478_v60  ;;  %v1296_v63 = vld [vmem:[#allocation5 + $0x110] sm:$0xf] }
 0x307   : > { %2637 = vmatprep.subr.bf16.mxu1 %v2485_v62  ;;  %v2477_v3 = vcombine.low %v1296_v63, %v1297_v1  ;;  %v1293_v21 = vld [vmem:[#allocation5 + $0xb0] sm:$0xf] }
 0x308   : > { %v1324_v22 = vld [vmem:[#allocation5 + $0x490] sm:$0xf] }
 0x309   : > { %2616 = vmatpush3.bf16.msra.mxu0 %v2446_v5  ;;  %v2493_v5 = vcombine.low %v1328_v2, %v1329_v4  ;;  %v1325_v24 = vld [vmem:[#allocation5 + $0x4b0] sm:$0xf] }
 0x30a   : > { %2617 = vmatprep.subr.bf16.mxu0 %v2453_v6  ;;  %2638 = vmatpush3.bf16.msra.mxu1 %v2477_v3  ;;  %v1310_v6 = vld [vmem:[#allocation5 + $0x2d0] sm:$0xf] }
 0x30b   : > { %v2484_v9 = vcombine.low %v1310_v6, %v1311_v7  ;;  %v1307_v28 = vld [vmem:[#allocation5 + $0x270] sm:$0xf] }
 0x30c   : > { %v1290_v30 = vld [vmem:[#allocation5 + $0x50] sm:$0xf] }
 0x30d   : > { %2618 = vmatpush3.bf16.msra.mxu0 %v2445_v12  ;;  %v1326_v12 = vld [vmem:[#allocation5 + $0x4d0] sm:$0xf]  ;;  %2639 = vmatprep.subr.bf16.mxu1 %v2484_v9 }
 0x30e   : > { %2619 = vmatprep.subr.bf16.mxu0 %v2452_v13  ;;  %v2476_v13 = vcombine.low %v1294_v10, %v1295_v11  ;;  %v2492_v15 = vcombine.low %v1326_v12, %v1327_v14  ;;  %v1291_v31 = vld [vmem:[#allocation5 + $0x70] sm:$0xf] }
 0x30f   : > { %v2474_v33 = vcombine.low %v1290_v30, %v1291_v31  ;;  %v1304_v36 = vld [vmem:[#allocation5 + $0x210] sm:$0xf]  ;;  %v1606_v30 = vld [vmem:[#allocation5 + $0x114] sm:$0xf] }
 0x310   : > { %2640 = vmatpush3.bf16.msra.mxu1 %v2476_v13  ;;  %v1305_v27 = vld [vmem:[#allocation5 + $0x230] sm:$0xf]  ;;  %v1607_v31 = vld [vmem:[#allocation5 + $0x134] sm:$0xf] }
 0x311   : > { %2620 = vmatpush3.bf16.msra.mxu0 %v2444_v18  ;;  %v2483_v18 = vcombine.low %v1308_v16, %v1309_v17  ;;  %v2481_v37 = vcombine.low %v1304_v36, %v1305_v27  ;;  %v1288_v20 = vld [vmem:[#allocation5 + $0x10] sm:$0xf]  ;;  %v1602_v36 = vld [vmem:[#allocation5 + $0x94] sm:$0xf] }
 0x312   : > { %2621 = vmatprep.subr.bf16.mxu0 %v2451_v19  ;;  %v1292_v19 = vld [vmem:[#allocation5 + $0x90] sm:$0xf]  ;;  %v1603_v27 = vld [vmem:[#allocation5 + $0xb4] sm:$0xf] }
 0x313   : > { %v2475_v23 = vcombine.low %v1292_v19, %v1293_v21  ;;  %2641 = vmatprep.subr.bf16.mxu1 %v2483_v18  ;;  %v1289_v38 = vld [vmem:[#allocation5 + $0x30] sm:$0xf]  ;;  %v1612_v19 = vld [vmem:[#allocation5 + $0x1d4] sm:$0xf] }
 0x314   : > { %v1320_v39 = vld [vmem:[#allocation5 + $0x410] sm:$0xf]  ;;  %v2473_v40 = vcombine.low %v1288_v20, %v1289_v38  ;;  %v1613_v21 = vld [vmem:[#allocation5 + $0x1f4] sm:$0xf] }
 0x315   : > { %2622 = vmatpush3.bf16.msra.mxu0 %v2443_v25  ;;  %v2491_v25 = vcombine.low %v1324_v22, %v1325_v24  ;;  %2642 = vmatpush3.bf16.msra.mxu1 %v2475_v23  ;;  %v1610_v22 = vld [vmem:[#allocation5 + $0x194] sm:$0xf]  ;;  %v2512_v23 = vcombine.low %v1612_v19, %v1613_v21 }
 0x316   : > { %2623 = vmatprep.subr.bf16.mxu0 %v2450_v26  ;;  %v1306_v26 = vld [vmem:[#allocation5 + $0x250] sm:$0xf]  ;;  %v1611_v24 = vld [vmem:[#allocation5 + $0x1b4] sm:$0xf] }
 0x317   : > { %v2482_v29 = vcombine.low %v1306_v26, %v1307_v28  ;;  %v1608_v26 = vld [vmem:[#allocation5 + $0x154] sm:$0xf] }
 0x318   : > { %v1609_v28 = vld [vmem:[#allocation5 + $0x174] sm:$0xf] }
 0x319   : > { %2624 = vmatpush3.bf16.msra.mxu0 %v2442_v32  ;;  %v1322_v32 = vld [vmem:[#allocation5 + $0x450] sm:$0xf]  ;;  %2643 = vmatprep.subr.bf16.mxu1 %v2482_v29  ;;  %v2510_v29 = vcombine.low %v1608_v26, %v1609_v28  ;;  %v1600_v20 = vld [vmem:[#allocation5 + $0x54] sm:$0xf]  ;;  %v1795_v26 = vld [vmem:[#allocation5 + $0x178] sm:$0xf] }
 0x31a   : > { %2692 = vmatprep.subr.bf16.mxu0 %v3159_v0  ;;  %2644 = vmatpush3.bf16.msra.mxu1 %v2474_v33  ;;  %v1604_v33 = vld [vmem:[#allocation5 + $0xd4] sm:$0xf]  ;;  %v1792_v28 = vld [vmem:[#allocation5 + $0x118] sm:$0xf] }
 0x31b   : > { %2645 = vmatprep.subr.bf16.mxu1 %v2481_v37  ;;  %v2507_v37 = vcombine.low %v1602_v36, %v1603_v27  ;;  %v1601_v38 = vld [vmem:[#allocation5 + $0x74] sm:$0xf]  ;;  %v1789_v36 = vld [vmem:[#allocation5 + $0xb8] sm:$0xf] }
 0x31c   : > { %2471 = vmatmul.mubr.msk.bf16.vlgmr.msra.gmra.mxu0 %vm3424_vm13, %v2470_v34  ;;  %v1323_v34 = vld [vmem:[#allocation5 + $0x470] sm:$0xf] }
 0x31d   : > { %2708 = vmatprep.mubr.msk.bf16.mxu0 %vm3160_vm0, %v3159_v0  ;;  %2693 = vmatpush3.bf16.msra.mxu0 %v2496_v41  ;;  %v2490_v35 = vcombine.low %v1322_v32, %v1323_v34  ;;  %v1321_v41 = vld [vmem:[#allocation5 + $0x430] sm:$0xf]  ;;  %v2509_v32 = vcombine.low %v1606_v30, %v1607_v31  ;;  %v1605_v34 = vld [vmem:[#allocation5 + $0xf4] sm:$0xf]  ;;  %v1793_v30 = vld [vmem:[#allocation5 + $0x138] sm:$0xf] }
 0x31e   : > { %2694 = vmatprep.subr.bf16.mxu0 %v3159_v0  ;;  %v2489_v42 = vcombine.low %v1320_v39, %v1321_v41  ;;  %2646 = vmatpush3.bf16.msra.mxu1 %v2473_v40  ;;  %v2506_v39 = vcombine.low %v1600_v20, %v1601_v38  ;;  %v1598_v40 = vld [vmem:[#allocation5 + $0x14] sm:$0xf]  ;;  %v2523_v31 = vcombine.low %v1792_v28, %v1793_v30  ;;  %v1787_v20 = vld [vmem:[#allocation5 + $0x78] sm:$0xf]  ;;  %v2504_v38 = vld [vmem:[#allocation7 + $0x5] ss:$0 sm:$0xff] }
 0x31f   : > { %1704 = vmatprep.subr.bf16.mxu1 %v3163_v8  ;;  %v1599_v41 = vld [vmem:[#allocation5 + $0x34] sm:$0xf] }
 0x321   : > { %2695 = vmatpush3.bf16.msra.mxu0 %v2495_v50 }
 0x322   : > { %2696 = vmatprep.subr.bf16.mxu0 %v3159_v0 }
 0x325   : > { %2697 = vmatpush3.bf16.msra.mxu0 %v2494_v61 }
 0x326   : > { %2698 = vmatprep.subr.bf16.mxu0 %v3159_v0 }
 0x329   : > { %2699 = vmatpush3.bf16.msra.mxu0 %v2493_v5 }
 0x32a   : > { %2700 = vmatprep.subr.bf16.mxu0 %v3159_v0 }
 0x32d   : > { %2701 = vmatpush3.bf16.msra.mxu0 %v2492_v15 }
 0x32e   : > { %2702 = vmatprep.subr.bf16.mxu0 %v3159_v0 }
 0x331   : > { %2703 = vmatpush3.bf16.msra.mxu0 %v2491_v25  ;;  %v2511_v25 = vcombine.low %v1610_v22, %v1611_v24 }
 0x332   : > { %2704 = vmatprep.subr.bf16.mxu0 %v3159_v0 }
 0x335   : > { %2705 = vmatpush3.bf16.msra.mxu0 %v2490_v35  ;;  %v2508_v35 = vcombine.low %v1604_v33, %v1605_v34  ;;  %v1791_v33 = vld [vmem:[#allocation5 + $0xf8] sm:$0xf] }
 0x336   : > { %2706 = vmatprep.subr.bf16.mxu0 %v3159_v0 }
 0x339   : > { %2707 = vmatpush3.bf16.msra.mxu0 %v2489_v42  ;;  %v2505_v42 = vcombine.low %v1598_v40, %v1599_v41 }
 0x33a   : > { %2712 = vmatprep.subr.bf16.mxu0 %v3159_v0 }
 0x3b9   : > { %v2603_v45 = vpop.f32.mrf.mxu1 }
 0x3bb   : > { %v2604_v47 = vpop.f32.mrf.mxu1 }
 0x3bc   : > { %v2581_v43 = vpop.f32.mrf.mxu0  ;;  %v2605_v55 = vadd.f32 %v2604_v47, %v2603_v45  ;;  %v1619_v47 = vld [vmem:[#allocation5 + $0x2b4] sm:$0xf] }
 0x3bd   : > { %v2606_v51 = vpop.f32.mrf.mxu1 }
 0x3be   : > { %v2582_v44 = vpop.f32.mrf.mxu0 }
 0x3bf   : > { %v2583_v48 = vadd.f32 %v2582_v44, %v2581_v43  ;;  %v2607_v56 = vpop.f32.mrf.mxu1  ;;  %v1620_v43 = vld [vmem:[#allocation5 + $0x2d4] sm:$0xf] }
 0x3c0   : > { %v2584_v46 = vpop.f32.mrf.mxu0  ;;  %v2608_v62 = vadd.f32 %v2607_v56, %v2606_v51  ;;  %v1621_v44 = vld [vmem:[#allocation5 + $0x2f4] sm:$0xf] }
 0x3c1   : > { %v1173_v52 = vadd.f32 %v2583_v48, %v2409_v49  ;;  %v2516_v45 = vcombine.low %v1620_v43, %v1621_v44  ;;  %v1785_v43 = vld [vmem:[#allocation5 + $0x38] sm:$0xf] }
 0x3c2   : > { %v2585_v50 = vpop.f32.mrf.mxu0 }
 0x3c3   : > { %v2586_v53 = vadd.f32 %v2585_v50, %v2584_v46  ;;  %v1214_v59 = vadd.f32 %v2605_v55, %v1173_v52  ;;  %v1618_v46 = vld [vmem:[#allocation5 + $0x294] sm:$0xf] }
 0x3c4   : > { %v2515_v48 = vcombine.low %v1618_v46, %v1619_v47  ;;  %v1617_v50 = vld [vmem:[#allocation5 + $0x274] sm:$0xf] }
 0x3c5   : > { %v1176_v58 = vadd.f32 %v2586_v53, %v2409_v49  ;;  %v1616_v49 = vld [vmem:[#allocation5 + $0x254] sm:$0xf] }
 0x3c6   : > { %v2514_v51 = vcombine.low %v1616_v49, %v1617_v50 }
 0x3c7   : > { %v1217_v3 = vadd.f32 %v2608_v62, %v1176_v58 }
 0x3dc   : > { %v2625_v54 = vpop.f32.mrf.mxu0 }
 0x3de   : > { %v2626_v57 = vpop.f32.mrf.mxu0 }
 0x3df   : > { %v2627_v60 = vadd.f32 %v2626_v57, %v2625_v54  ;;  %v2472_v54 = vld [vmem:[#allocation7 + $0x4] ss:$0 sm:$0xff] }
 0x3e0   : > { %v2628_v61 = vpop.f32.mrf.mxu0 }
 0x3e1   : > { %v1255_v63 = vadd.f32 %v2627_v60, %v1214_v59  ;;  %v1614_v60 = vld [vmem:[#allocation5 + $0x214] sm:$0xf] }
 0x3e2   : > { %v2629_v1 = vpop.f32.mrf.mxu0 }
 0x3e3   : > { %vm1261_vm14 = vcmp.ge.f32.partialorder %v1255_v63, 0.0  ;;  %v1263_v2 = vmul.f32 0.1, %v1255_v63  ;;  %v2630_v4 = vadd.f32 %v2629_v1, %v2628_v61  ;;  %v1615_v61 = vld [vmem:[#allocation5 + $0x234] sm:$0xf] }
 0x3e5   : > { %v1265_v5 = vsel %vm1261_vm14, %v1255_v63, %v1263_v2  ;;  %v1258_v6 = vadd.f32 %v2630_v4, %v1217_v3  ;;  %v2513_v63 = vcombine.low %v1614_v60, %v1615_v61 }
 0x3e6   : > { %1267 = vst [vmem:[%s3448_s16] sm:$0xff] %v1265_v5  ;;  %v1272_v9 = vrot.slane %v1265_v5, 6  ;;  %v1279_v11 = vrot.slane %v1265_v5, 2 }
 0x3e7   : > { %vm1262_vm6 = vcmp.ge.f32.partialorder %v1258_v6, 0.0  ;;  %v1264_v7 = vmul.f32 0.1, %v1258_v6 }
 0x3e9   : > { %v1266_v10 = vsel %vm1262_vm6, %v1258_v6, %v1264_v7 }
 0x3ea   : > { %1268 = vst [vmem:[%s3448_s16 + $0x8] sm:$0xff] %v1266_v10  ;;  %v1273_v12 = vrot.slane %v1266_v10, 6  ;;  %v1280_v13 = vrot.slane %v1266_v10, 2  ;;  %v1286_v14 = vpack.c.bf16 %v1266_v10, %v1265_v5  ;;  %s2970_s16 = scalar_lea.vmem %s3550_s2, 256 }
 0x3eb   : > { %p2971_p11 = scmp.ne.s32.totalorder %s3550_s2, %s2970_s16 }
 0x3ec   : > { %1519 = vmatprep.mubr.bf16.mxu1 %v1286_v14  ;;  %v1274_v15 = vsel %vm1271_vm15, %v1272_v9, %v1273_v12  ;;  %v1281_v16 = vsel %vm1278_vm8, %v1279_v11, %v1280_v13 }
 0x3ed   : > { %v2499_v17 = vpack.c.bf16 %v1274_v15, %v1272_v9  ;;  %v2502_v18 = vpack.c.bf16 %v1280_v13, %v1281_v16  ;;  %p2972_p1 = pnand %p2971_p11, %p3777_p10 }
 0x3ef   : > { %2500 = vmatmul.mubr.msk.bf16.vlgmr.msra.gmra.mxu1 %vm2498_vm9, %v2499_v17  ;;  %2709 = vmatmul.mubr.msk.bf16.vlgmr.msra.gmra.mxu0 %vm2501_vm10, %v2502_v18  ;;  %p2973_p2 = pneg %p2972_p1 }
 0x3f0   : > { %2724 = vmatprep.mubr.msk.bf16.mxu0 %vm3160_vm0, %v3159_v0  ;;  %1705 = vmatpush1.bf16.msra.mxu1 %v2512_v23 }
 0x3f1   : > { %1706 = vmatprep.subr.bf16.mxu1 %v3163_v8 }
 0x3f4   : > { %1707 = vmatpush1.bf16.msra.mxu1 %v2511_v25  ;;  %v1794_v25 = vld [vmem:[#allocation5 + $0x158] sm:$0xf] }
 0x3f5   : > { %1708 = vmatprep.subr.bf16.mxu1 %v3163_v8 }
 0x3f8   : > { %1709 = vmatpush1.bf16.msra.mxu1 %v2510_v29  ;;  %v2524_v29 = vcombine.low %v1794_v25, %v1795_v26  ;;  %v1925_v25 = vld [vmem:[#allocation5 + $0x7c] sm:$0xf]  ;;  %v2518_v26 = vld [vmem:[#allocation7 + $0x6] ss:$0 sm:$0xff] }
 0x3f9   : > { %1710 = vmatprep.subr.bf16.mxu1 %v3163_v8 }
 0x3fa   : > { %2713 = vmatpush3.bf16.msra.mxu0 %v2524_v29 }
 0x3fb   : > { %2714 = vmatprep.subr.bf16.mxu0 %v3159_v0 }
 0x3fc   : > { %1711 = vmatpush1.bf16.msra.mxu1 %v2509_v32  ;;  %v1790_v32 = vld [vmem:[#allocation5 + $0xd8] sm:$0xf] }
 0x3fd   : > { %1712 = vmatprep.subr.bf16.mxu1 %v3163_v8  ;;  %v2522_v34 = vcombine.low %v1790_v32, %v1791_v33  ;;  %v1923_v32 = vld [vmem:[#allocation5 + $0x3c] sm:$0xf] }
 0x3fe   : > { %2715 = vmatpush3.bf16.msra.mxu0 %v2523_v31  ;;  %v1922_v31 = vld [vmem:[#allocation5 + $0x1c] sm:$0xf] }
 0x3ff   : > { %2716 = vmatprep.subr.bf16.mxu0 %v3159_v0 }
 0x400   : > { %1713 = vmatpush1.bf16.msra.mxu1 %v2508_v35  ;;  %v1788_v35 = vld [vmem:[#allocation5 + $0x98] sm:$0xf] }
 0x401   : > { %1714 = vmatprep.subr.bf16.mxu1 %v3163_v8  ;;  %v2521_v27 = vcombine.low %v1788_v35, %v1789_v36 }
 0x402   : > { %2717 = vmatpush3.bf16.msra.mxu0 %v2522_v34  ;;  %v2527_v34 = vcombine.low %v1922_v31, %v1923_v32 }
 0x403   : > { %2718 = vmatprep.subr.bf16.mxu0 %v3159_v0 }
 0x404   : > { %1715 = vmatpush1.bf16.msra.mxu1 %v2507_v37  ;;  %v1786_v37 = vld [vmem:[#allocation5 + $0x58] sm:$0xf] }
 0x405   : > { %1716 = vmatprep.subr.bf16.mxu1 %v3163_v8 }
 0x406   : > { %2719 = vmatpush3.bf16.msra.mxu0 %v2521_v27 }
 0x407   : > { %2720 = vmatprep.subr.bf16.mxu0 %v3159_v0 }
 0x408   : > { %1717 = vmatpush1.bf16.msra.mxu1 %v2506_v39  ;;  %v2520_v39 = vcombine.low %v1786_v37, %v1787_v20 }
 0x409   : > { %1718 = vmatprep.subr.bf16.mxu1 %v3163_v8 }
 0x40a   : > { %2721 = vmatpush3.bf16.msra.mxu0 %v2520_v39 }
 0x40b   : > { %2722 = vmatprep.subr.bf16.mxu0 %v3159_v0 }
 0x40c   : > { %1719 = vmatpush1.bf16.msra.mxu1 %v2505_v42  ;;  %v1784_v42 = vld [vmem:[#allocation5 + $0x18] sm:$0xf] }
 0x40d   : > { %1728 = vmatprep.subr.bf16.mxu1 %v3163_v8 }
 0x410   : > { %1729 = vmatpush2.bf16.msra.mxu1 %v2516_v45  ;;  %v2519_v45 = vcombine.low %v1784_v42, %v1785_v43 }
 0x411   : > { %1730 = vmatprep.subr.bf16.mxu1 %v3163_v8 }
 0x412   : > { %2723 = vmatpush3.bf16.msra.mxu0 %v2519_v45 }
 0x414   : > { %1731 = vmatpush2.bf16.msra.mxu1 %v2515_v48 }
 0x415   : > { %1732 = vmatprep.subr.bf16.mxu1 %v3163_v8 }
 0x418   : > { %1733 = vmatpush2.bf16.msra.mxu1 %v2514_v51 }
 0x419   : > { %1734 = vmatprep.subr.bf16.mxu1 %v3163_v8 }
 0x41c   : > { %1735 = vmatpush2.bf16.msra.mxu1 %v2513_v63 }
 0x41d   : > { %2728 = vmatprep.subr.bf16.mxu1 %v3159_v0 }
 0x4af   : > { %v2647_v52 = vpop.f32.mrf.mxu1  ;;  %v1562_v53 = vpop.f32.mrf.mxu0 }
 0x4b1   : > { %v2648_v55 = vpop.f32.mrf.mxu1  ;;  %v2710_v56 = vpop.f32.mrf.mxu0 }
 0x4b2   : > { %v2649_v57 = vadd.f32 %v2648_v55, %v2647_v52 }
 0x4b3   : > { %v2650_v58 = vpop.f32.mrf.mxu1  ;;  %v1565_v59 = vpop.f32.mrf.mxu0 }
 0x4b4   : > { %v1522_v62 = vadd.f32 %v2649_v57, %v2472_v54 }
 0x4b5   : > { %v2651_v1 = vpop.f32.mrf.mxu1  ;;  %v2711_v2 = vpop.f32.mrf.mxu0 }
 0x4b6   : > { %v1563_v3 = vadd.f32 %v1562_v53, %v1522_v62  ;;  %v2652_v4 = vadd.f32 %v2651_v1, %v2650_v58 }
 0x4b8   : > { %v1571_v8 = vmul.f32 0.1, %v1563_v3  ;;  %v1525_v5 = vadd.f32 %v2652_v4, %v2472_v54  ;;  %vm1569_vm11 = vcmp.ge.f32.partialorder %v1563_v3, 0.0 }
 0x4ba   : > { %v1566_v6 = vadd.f32 %v1565_v59, %v1525_v5  ;;  %v1573_v7 = vsel %vm1569_vm11, %v1563_v3, %v1571_v8 }
 0x4bb   : > { %1575 = vst.msk [vmem:[%s3471_s15] sm:$0xff] %vm432_vm4, %v1573_v7  ;;  %v1580_v9 = vrot.slane %v1573_v7, 4 }
 0x4bc   : > { %v1572_v10 = vmul.f32 0.1, %v1566_v6  ;;  %vm1570_vm13 = vcmp.ge.f32.partialorder %v1566_v6, 0.0 }
 0x4bd   : > { %v1585_v11 = vsel %vm1579_vm12, 0.0, %v1580_v9 }
 0x4be   : > { %v1574_v12 = vsel %vm1570_vm13, %v1566_v6, %v1572_v10 }
 0x4bf   : > { %1576 = vst.msk [vmem:[%s3471_s15 + $0x8] sm:$0xff] %vm432_vm4, %v1574_v12  ;;  %v1581_v13 = vrot.slane %v1574_v12, 4  ;;  %v2865_v14 = vpack.i.bf16 %v1574_v12, %v1573_v7  ;;  %v1933_v12 = vld [vmem:[#allocation5 + $0x17c] sm:$0xf]  ;;  %s3165_s15 = smov [#allocation9]  }
 0x4c1   : > { %2866 = vrot.lane.b32.xlu0 %v2865_v14, %s3162_s13  ;;  %v1582_v15 = vsel %vm1579_vm12, %v1580_v9, %v1581_v13  ;;  %v1587_v16 = vsel %vm1579_vm12, %v1581_v13, 0.0  ;;  %v1930_v13 = vld [vmem:[#allocation5 + $0x11c] sm:$0xf] }
 0x4c2   : > { %v1597_v17 = vpack.c.bf16 %v1587_v16, %v1582_v15 }
 0x4c4   : > { %2517 = vmatprep.mubr.msk.bf16.mxu1 %vm432_vm4, %v1597_v17  ;;  %v1928_v17 = vld [vmem:[#allocation5 + $0xdc] sm:$0xf] }
 0x533   : > { %v2867_v18 = vpop.permute.xlu0 %2866 }
 0x534   : > { %v2869_v19 = vunpack.i.h.bf16 %v2867_v18  ;;  %v2868_v21 = vunpack.i.l.bf16 %v2867_v18  ;;  %v1929_v18 = vld [vmem:[#allocation5 + $0xfc] sm:$0xf] }
 0x536   : > { %v1594_v22 = vsel %vm432_vm4, %v1585_v11, %v2868_v21  ;;  %v1595_v23 = vsel %vm432_vm4, %v1582_v15, %v2869_v19  ;;  %v1932_v11 = vld [vmem:[#allocation5 + $0x15c] sm:$0xf]  ;;  %v2530_v19 = vcombine.low %v1928_v17, %v1929_v18 }
 0x537   : > { %v1596_v24 = vpack.c.bf16 %v1595_v23, %v1594_v22  ;;  %v2532_v14 = vcombine.low %v1932_v11, %v1933_v12  ;;  %v1931_v15 = vld [vmem:[#allocation5 + $0x13c] sm:$0xf] }
 0x538   : > { %v2531_v16 = vcombine.low %v1930_v13, %v1931_v15  ;;  %v1926_v21 = vld [vmem:[#allocation5 + $0x9c] sm:$0xf] }
 0x539   : > { %1737 = vmatmul.mubr.bf16.vlgmr.msra.gmra.mxu1 %v1596_v24  ;;  %v1927_v22 = vld [vmem:[#allocation5 + $0xbc] sm:$0xf] }
 0x53a   : > { %2740 = vmatprep.mubr.msk.bf16.mxu1 %vm3160_vm0, %v3159_v0  ;;  %2729 = vmatpush3.bf16.msra.mxu1 %v2532_v14  ;;  %v2529_v23 = vcombine.low %v1926_v21, %v1927_v22  ;;  %v1924_v24 = vld [vmem:[#allocation5 + $0x5c] sm:$0xf] }
 0x53b   : > { %2730 = vmatprep.subr.bf16.mxu1 %v3159_v0  ;;  %v2528_v28 = vcombine.low %v1924_v24, %v1925_v25 }
 0x53e   : > { %2731 = vmatpush3.bf16.msra.mxu1 %v2531_v16 }
 0x53f   : > { %2732 = vmatprep.subr.bf16.mxu1 %v3159_v0 }
 0x542   : > { %2733 = vmatpush3.bf16.msra.mxu1 %v2530_v19 }
 0x543   : > { %2734 = vmatprep.subr.bf16.mxu1 %v3159_v0 }
 0x546   : > { %2735 = vmatpush3.bf16.msra.mxu1 %v2529_v23 }
 0x547   : > { %2736 = vmatprep.subr.bf16.mxu1 %v3159_v0 }
 0x54a   : > { %2737 = vmatpush3.bf16.msra.mxu1 %v2528_v28 }
 0x54b   : > { %2738 = vmatprep.subr.bf16.mxu1 %v3159_v0 }
 0x54e   : > { %2739 = vmatpush3.bf16.msra.mxu1 %v2527_v34 }
 0x5f9   : > { %v1738_v40 = vpop.f32.mrf.mxu1 }
 0x5fa   : > { %v1739_v41 = vadd.f32 %v2504_v38, %v1738_v40 }
 0x5fb   : > { %v1740_v44 = vpop.f32.mrf.mxu1 }
 0x5fc   : > { %vm1745_vm0 = vcmp.ge.f32.partialorder %v1739_v41, 0.0  ;;  %v1747_v46 = vmul.f32 0.1, %v1739_v41 }
 0x5fd   : > { %v1741_v47 = vpop.f32.mrf.mxu1 }
 0x5fe   : > { %v1749_v48 = vsel %vm1745_vm0, %v1739_v41, %v1747_v46  ;;  %v1742_v49 = vadd.f32 %v2504_v38, %v1741_v47 }
 0x5ff   : > { %1751 = vst.msk [vmem:[%s3489_s25] sm:$0xff] %vm429_vm3, %v1749_v48  ;;  %v1743_v50 = vpop.f32.mrf.mxu1  ;;  %v1755_v52 = vrot.slane %v1749_v48, 7  ;;  %v1761_v54 = vrot.slane %v1749_v48, 1 }
 0x600   : > { %vm1746_vm14 = vcmp.ge.f32.partialorder %v1742_v49, 0.0  ;;  %v1748_v51 = vmul.f32 0.1, %v1742_v49 }
 0x601   : > { %v1760_v3 = vsel %vm403_vm1, 0.0, %v1755_v52 }
 0x602   : > { %v1750_v53 = vsel %vm1746_vm14, %v1742_v49, %v1748_v51 }
 0x603   : > { %1752 = vst.msk [vmem:[%s3489_s25 + $0x8] sm:$0xff] %vm429_vm3, %v1750_v53  ;;  %v1756_v55 = vrot.slane %v1750_v53, 7  ;;  %v2870_v56 = vpack.i.bf16 %v1750_v53, %v1749_v48  ;;  %v1762_v57 = vrot.slane %v1750_v53, 1 }
 0x605   : > { %2871 = vrot.lane.b32.xlu1 %v2870_v56, %s3161_s11  ;;  %v1763_v58 = vsel %vm410_vm2, %v1761_v54, %v1762_v57  ;;  %v1765_v59 = vsel %vm410_vm2, %v1762_v57, 0.0  ;;  %v1757_v60 = vsel %vm403_vm1, %v1755_v52, %v1756_v55 }
 0x606   : > { %v2875_v61 = vpack.i.bf16 %v1765_v59, %v1763_v58 }
 0x608   : > { %2876 = vrot.lane.b32.xlu0 %v2875_v61, %s3162_s13 }
 0x677   : > { %v2872_v62 = vpop.permute.xlu1 %2871 }
 0x678   : > { %v2874_v63 = vunpack.i.h.bf16 %v2872_v62  ;;  %v2873_v1 = vunpack.i.l.bf16 %v2872_v62 }
 0x67a   : > { %v2877_v2 = vpop.permute.xlu0 %2876  ;;  %v1779_v5 = vsel %vm429_vm3, %v1760_v3, %v2873_v1  ;;  %v1780_v6 = vsel %vm429_vm3, %v1757_v60, %v2874_v63 }
 0x67b   : > { %v2879_v4 = vunpack.i.h.bf16 %v2877_v2  ;;  %v2878_v8 = vunpack.i.l.bf16 %v2877_v2 }
 0x67d   : > { %v1781_v7 = vsel %vm432_vm4, %v1779_v5, %v2878_v8  ;;  %v1782_v9 = vsel %vm432_vm4, %v1780_v6, %v2879_v4 }
 0x67e   : > { %v1783_v10 = vpack.c.bf16 %v1782_v9, %v1781_v7 }
 0x680   : > { %2725 = vmatmul.mubr.msk.bf16.vlgmr.msra.gmra.mxu0 %vm491_vm5, %v1783_v10 }
 0x740   : > { %v1876_v29 = vpop.f32.mrf.mxu0 }
 0x741   : > { %v1877_v30 = vadd.f32 %v2518_v26, %v1876_v29 }
 0x742   : > { %v2726_v33 = vpop.f32.mrf.mxu0 }
 0x743   : > { %vm1883_vm15 = vcmp.ge.f32.partialorder %v1877_v30, 0.0  ;;  %v1885_v35 = vmul.f32 0.1, %v1877_v30 }
 0x744   : > { %v1879_v36 = vpop.f32.mrf.mxu0 }
 0x745   : > { %v1887_v27 = vsel %vm1883_vm15, %v1877_v30, %v1885_v35  ;;  %v1880_v37 = vadd.f32 %v2518_v26, %v1879_v36 }
 0x746   : > { %1889 = vst.msk [vmem:[%s3512_s20] sm:$0xff] %vm429_vm3, %v1887_v27  ;;  %v2727_v20 = vpop.f32.mrf.mxu0  ;;  %v1893_v0 = vrot.slane %v1887_v27, 7  ;;  %v1899_v40 = vrot.slane %v1887_v27, 1 }
 0x747   : > { %vm1884_vm6 = vcmp.ge.f32.partialorder %v1880_v37, 0.0  ;;  %v1886_v38 = vmul.f32 0.1, %v1880_v37 }
 0x748   : > { %v1898_v52 = vsel %vm403_vm1, 0.0, %v1893_v0 }
 0x749   : > { %v1888_v39 = vsel %vm1884_vm6, %v1880_v37, %v1886_v38 }
 0x74a   : > { %1890 = vst.msk [vmem:[%s3512_s20 + $0x8] sm:$0xff] %vm429_vm3, %v1888_v39  ;;  %v1894_v41 = vrot.slane %v1888_v39, 7  ;;  %v2880_v42 = vpack.i.bf16 %v1888_v39, %v1887_v27  ;;  %v1900_v43 = vrot.slane %v1888_v39, 1  ;;  %s2974_s20 = sshll.u32 %s3165_s15, 4  ;;  %s2975_s20 = int_to_ptr.vmem [resolvable:$false] %s2974_s20 }
 0x74b   : > { %s2976_s21 = scalar_lea.vmem %s2975_s20, 512  ;;  %p2977_p6 = scmp.lt.s32.totalorder %s3550_s2, %s2975_s20 }
 0x74c   : > { %2881 = vrot.lane.b32.xlu1 %v2880_v42, %s3161_s11  ;;  %v1901_v44 = vsel %vm410_vm2, %v1899_v40, %v1900_v43  ;;  %v1903_v45 = vsel %vm410_vm2, %v1900_v43, 0.0  ;;  %v1895_v46 = vsel %vm403_vm1, %v1893_v0, %v1894_v41  ;;  %s3542_s11 = sshll.u32 %s3240_s9, 8  ;;  %p2978_p12 = scmp.lt.s32.totalorder %s2976_s21, %s2970_s16 }
 0x74d   : > { %v2885_v47 = vpack.i.bf16 %v1903_v45, %v1901_v44  ;;  %s3548_s0 = scalar_lea.hbm %s3776_s4, %s3542_s11 }
 0x74e   : > { %p2979_p7 = por %p2978_p12, %p2977_p6 }
 0x74f   : > { %2886 = vrot.lane.b32.xlu0 %v2885_v47, %s3162_s13 }
 0x750   : > { %p2980_p9 = pnand %p2979_p7, %p2973_p2 }
 0x7be   : > { %v2882_v48 = vpop.permute.xlu1 %2881 }
 0x7bf   : > { %v2884_v49 = vunpack.i.h.bf16 %v2882_v48  ;;  %v2883_v50 = vunpack.i.l.bf16 %v2882_v48 }
 0x7c1   : > { %v2887_v51 = vpop.permute.xlu0 %2886  ;;  %v1917_v55 = vsel %vm429_vm3, %v1898_v52, %v2883_v50  ;;  %v1918_v56 = vsel %vm429_vm3, %v1895_v46, %v2884_v49 }
 0x7c2   : > { %v2889_v53 = vunpack.i.h.bf16 %v2887_v51  ;;  %v2888_v54 = vunpack.i.l.bf16 %v2887_v51 }
 0x7c4   : > { %v1919_v57 = vsel %vm432_vm4, %v1917_v55, %v2888_v54  ;;  %v1920_v58 = vsel %vm432_vm4, %v1918_v56, %v2889_v53 }
 0x7c5   : > { %v1921_v59 = vpack.c.bf16 %v1920_v58, %v1919_v57 }
 0x7c7   : > { %2741 = vmatmul.mubr.msk.bf16.vlgmr.msra.gmra.mxu1 %vm491_vm5, %v1921_v59 }
 0x7c8   : > { %2983 = shalt.err (!%p2980_p9)
}
 0x7c9   : > { %s2984_s13 = scalar_lea.hbm %s3548_s0, 256  ;;  %s2988_s15 = scalar_lea.hbm %s3776_s4, 512 }
 0x7ca   : > { %p2985_p13 = scmp.ne.s32.totalorder %s3548_s0, %s2984_s13  ;;  %p2989_p4 = scmp.lt.s32.totalorder %s3548_s0, %s3776_s4 }
 0x7cb   : > { %p2990_p8 = scmp.lt.s32.totalorder %s2988_s15, %s2984_s13 }
 0x7cc   : > { %p2986_p5 = pnand %p2985_p13, %p3777_p10 }
 0x7cd   : > { %p2991_p3 = por %p2990_p8, %p2989_p4 }
 0x7ce   : > { %p2987_p0 = pneg %p2986_p5 }
 0x7d0   : > { %p2992_p11 = pnand %p2991_p3, %p2987_p0 }
 0x7d2   : > { %2995 = shalt.err (!%p2992_p11)
}
 0x7d3   : > { %s3742_s21 = smov 128   ;;  %s3744_s16 = smov 8  }
 0x7d4   : > { %2755 = dma.vmem_to_hbm [thread:$0]  (%p3777_p10), %s3550_s2, 256, %s3548_s0, %s3554_s26, %s3742_s21, %s3742_s21, %s3744_s16  }
 0x7d5   : > { %s3778_s6 = sld [smem:[#allocation28_spill]]  ;;  %s3779_s20 = sshll.u32 %s3489_s25, 4  ;;  %s3588_s20 = int_to_ptr.vmem [resolvable:$true] %s3779_s20 }
 0x7d6   : > { %s3780_s13 = sand.u32 1, %s3240_s9   ;;  %s2996_s15 = scalar_lea.vmem %s3588_s20, 256 }
 0x7d7   : > { %s3592_s24 = scalar_lea.sflag [#allocation13], %s3780_s13  ;;  %p2997_p1 = scmp.ne.s32.totalorder %s3588_s20, %s2996_s15 }
 0x7d8   : > { %s3168_s0 = smov [#allocation12]  }
 0x7d9   : > { %p2998_p2 = pnand %p2997_p1, %p3777_p10  ;;  %s3000_s2 = sshll.u32 %s3168_s0, 4  ;;  %s3001_s2 = int_to_ptr.vmem [resolvable:$false] %s3000_s2 }
 0x7da   : > { %s3002_s29 = scalar_lea.vmem %s3001_s2, 512  ;;  %p3003_p12 = scmp.lt.s32.totalorder %s3588_s20, %s3001_s2 }
 0x7db   : > { %s3584_s23 = scalar_lea.hbm %s3778_s6, %s3542_s11  ;;  %p2999_p6 = pneg %p2998_p2 }
 0x7dc   : > { %p3004_p7 = scmp.lt.s32.totalorder %s3002_s29, %s2996_s15 }
 0x7de   : > { %p3005_p9 = por %p3004_p7, %p3003_p12 }
 0x7e0   : > { %p3006_p13 = pnand %p3005_p9, %p2999_p6 }
 0x7e2   : > { %3009 = shalt.err (!%p3006_p13)
}
 0x7e3   : > { %s3010_s25 = scalar_lea.hbm %s3584_s23, 256  ;;  %s3014_s0 = scalar_lea.hbm %s3778_s6, 512 }
 0x7e4   : > { %p3011_p5 = scmp.ne.s32.totalorder %s3584_s23, %s3010_s25  ;;  %p3015_p8 = scmp.lt.s32.totalorder %s3584_s23, %s3778_s6 }
 0x7e5   : > { %p3016_p3 = scmp.lt.s32.totalorder %s3014_s0, %s3010_s25 }
 0x7e6   : > { %p3012_p0 = pnand %p3011_p5, %p3777_p10 }
 0x7e7   : > { %p3017_p11 = por %p3016_p3, %p3015_p8 }
 0x7e8   : > { %p3013_p4 = pneg %p3012_p0 }
 0x7ea   : > { %p3018_p1 = pnand %p3017_p11, %p3013_p4 }
 0x7ec   : > { %3021 = shalt.err (!%p3018_p1)
}
 0x7ed   : > { %s3781_s15 = smov 8   ;;  %s3782_s2 = smov 128  }
 0x7ee   : > { %2757 = dma.vmem_to_hbm [thread:$0]  (%p3777_p10), %s3588_s20, 256, %s3584_s23, %s3592_s24, %s3782_s2, %s3782_s2, %s3781_s15  }
 0x7ef   : > { %s2553_s21 = sshll.u32 %s3240_s9, 9  ;;  %s3628_s0 = scalar_lea.hbm %s3731_s5, %s3542_s11 }
 0x7f0   : > { %s3622_s25 = scalar_lea.hbm %s3729_s3, %s2553_s21  ;;  %s2025_s4 = scalar_lea.sflag [#allocation4], %s3348_s1 }
 0x7f1   : > { %s3022_s6 = scalar_lea.vmem %s3532_s18, 512  ;;  %s3169_s28 = smov [#allocation8]  }
 0x7f2   : > { %p3023_p2 = scmp.ne.s32.totalorder %s3532_s18, %s3022_s6  ;;  %s3026_s14 = sshll.u32 %s3169_s28, 4  ;;  %s3027_s14 = int_to_ptr.vmem [resolvable:$false] %s3026_s14 }
 0x7f3   : > { %s3028_s23 = scalar_lea.vmem %s3027_s14, 1024  ;;  %p3029_p7 = scmp.lt.s32.totalorder %s3532_s18, %s3027_s14 }
 0x7f4   : > { %p3024_p6 = pnand %p3023_p2, %p3777_p10  ;;  %p3030_p9 = scmp.lt.s32.totalorder %s3028_s23, %s3022_s6 }
 0x7f6   : > { %p3025_p12 = pneg %p3024_p6  ;;  %p3031_p13 = por %p3030_p9, %p3029_p7 }
 0x7f8   : > { %p3032_p5 = pnand %p3031_p13, %p3025_p12 }
 0x7fa   : > { %3035 = shalt.err (!%p3032_p5)
}
 0x7fb   : > { %s3036_s20 = scalar_lea.hbm %s3622_s25, 512  ;;  %s3040_s28 = scalar_lea.hbm %s3729_s3, 1024 }
 0x7fc   : > { %p3037_p0 = scmp.ne.s32.totalorder %s3622_s25, %s3036_s20  ;;  %p3041_p3 = scmp.lt.s32.totalorder %s3622_s25, %s3729_s3 }
 0x7fd   : > { %p3042_p11 = scmp.lt.s32.totalorder %s3040_s28, %s3036_s20 }
 0x7fe   : > { %p3038_p4 = pnand %p3037_p0, %p3777_p10 }
 0x7ff   : > { %p3043_p1 = por %p3042_p11, %p3041_p3 }
 0x800   : > { %p3039_p8 = pneg %p3038_p4 }
 0x802   : > { %p3044_p2 = pnand %p3043_p1, %p3039_p8 }
 0x804   : > { %3047 = shalt.err (!%p3044_p2)
}
 0x805   : > { %s3170_s6 = smov 256   ;;  %s3171_s14 = smov 16  }
 0x806   : > { %2754 = dma.vmem_to_hbm [thread:$0]  (%p3777_p10), %s3532_s18, 512, %s3622_s25, %s2025_s4, %s3170_s6, %s3170_s6, %s3171_s14  }
 0x807   : > { %s3048_s13 = scalar_lea.vmem %s3535_s10, 256  ;;  %s3172_s23 = smov [#allocation11]  }
 0x808   : > { %p3049_p6 = scmp.ne.s32.totalorder %s3535_s10, %s3048_s13  ;;  %s3052_s20 = sshll.u32 %s3172_s23, 4  ;;  %s3053_s20 = int_to_ptr.vmem [resolvable:$false] %s3052_s20 }
 0x809   : > { %s3054_s21 = scalar_lea.vmem %s3053_s20, 512  ;;  %p3055_p9 = scmp.lt.s32.totalorder %s3535_s10, %s3053_s20 }
 0x80a   : > { %p3050_p12 = pnand %p3049_p6, %p3777_p10  ;;  %p3056_p13 = scmp.lt.s32.totalorder %s3054_s21, %s3048_s13 }
 0x80c   : > { %p3051_p7 = pneg %p3050_p12  ;;  %p3057_p5 = por %p3056_p13, %p3055_p9 }
 0x80e   : > { %p3058_p0 = pnand %p3057_p5, %p3051_p7 }
 0x810   : > { %3061 = shalt.err (!%p3058_p0)
}
 0x811   : > { %s3062_s1 = scalar_lea.hbm %s3628_s0, 256  ;;  %s3066_s25 = scalar_lea.hbm %s3731_s5, 512 }
 0x812   : > { %p3063_p4 = scmp.ne.s32.totalorder %s3628_s0, %s3062_s1  ;;  %p3067_p11 = scmp.lt.s32.totalorder %s3628_s0, %s3731_s5 }
 0x813   : > { %p3068_p1 = scmp.lt.s32.totalorder %s3066_s25, %s3062_s1 }
 0x814   : > { %p3064_p8 = pnand %p3063_p4, %p3777_p10 }
 0x815   : > { %p3069_p2 = por %p3068_p1, %p3067_p11 }
 0x816   : > { %p3065_p3 = pneg %p3064_p8 }
 0x818   : > { %p3070_p6 = pnand %p3069_p2, %p3065_p3 }
 0x81a   : > { %3073 = shalt.err (!%p3070_p6)
}
 0x81b   : > { %2756 = dma.vmem_to_hbm [thread:$0]  (%p3777_p10), %s3535_s10, 256, %s3628_s0, %s3554_s26, %s3782_s2, %s3782_s2, %s3781_s15  }
 0x81c   : > { %s2126_s6 = scalar_lea.hbm %s3733_s7, %s3542_s11  ;;  %s3074_s14 = scalar_lea.vmem %s3538_s22, 256 }
 0x81d   : > { %p3075_p12 = scmp.ne.s32.totalorder %s3538_s22, %s3074_s14  ;;  %s3173_s13 = smov [#allocation14]  }
 0x81e   : > { %s3078_s23 = sshll.u32 %s3173_s13, 4  ;;  %s3079_s23 = int_to_ptr.vmem [resolvable:$false] %s3078_s23 }
 0x81f   : > { %p3076_p7 = pnand %p3075_p12, %p3777_p10  ;;  %s3080_s20 = scalar_lea.vmem %s3079_s23, 512 }
 0x820   : > { %p3081_p13 = scmp.lt.s32.totalorder %s3538_s22, %s3079_s23  ;;  %p3082_p5 = scmp.lt.s32.totalorder %s3080_s20, %s3074_s14 }
 0x821   : > { %p3077_p9 = pneg %p3076_p7 }
 0x822   : > { %p3083_p0 = por %p3082_p5, %p3081_p13 }
 0x824   : > { %p3084_p4 = pnand %p3083_p0, %p3077_p9 }
 0x826   : > { %3087 = shalt.err (!%p3084_p4)
}
 0x827   : > { %s3088_s21 = scalar_lea.hbm %s2126_s6, 256  ;;  %s3092_s26 = scalar_lea.hbm %s3733_s7, 512 }
 0x828   : > { %p3089_p8 = scmp.ne.s32.totalorder %s2126_s6, %s3088_s21  ;;  %p3093_p1 = scmp.lt.s32.totalorder %s2126_s6, %s3733_s7 }
 0x829   : > { %p3094_p2 = scmp.lt.s32.totalorder %s3092_s26, %s3088_s21 }
 0x82a   : > { %p3090_p3 = pnand %p3089_p8, %p3777_p10 }
 0x82b   : > { %p3095_p6 = por %p3094_p2, %p3093_p1 }
 0x82c   : > { %p3091_p11 = pneg %p3090_p3 }
 0x82e   : > { %p3096_p12 = pnand %p3095_p6, %p3091_p11 }
 0x830   : > { %3099 = shalt.err (!%p3096_p12)
}
 0x831   : > { %2758 = dma.vmem_to_hbm [thread:$0]  (%p3777_p10), %s3538_s22, 256, %s2126_s6, %s3592_s24, %s3782_s2, %s3782_s2, %s3781_s15   ;;  %v2526_v60 = vld [vmem:[#allocation7 + $0x7] ss:$0 sm:$0xff]  ;;  %vm2021_vm1 = vcmask 15360  }
 0x832   : > { %p393_p7 = scmp.lt.s32.totalorder %s3240_s9, 1 }
 0x834   : > { %s3791_s9 = smov (!%p393_p7, %s3240_s9), 1 }
 0x835   : > { %s2552_s4 = sshll.u32 %s3791_s9, 4 }
 0x836   : > { %s397_s16 = scalar_lea.vmem %s3734_s8, %s2552_s4 }
 0x887   : > { %v2014_v61 = vpop.f32.mrf.mxu1 }
 0x888   : > { %v2015_v62 = vadd.f32 %v2526_v60, %v2014_v61 }
 0x889   : > { %v2742_v63 = vpop.f32.mrf.mxu1 }
 0x88a   : > { %2022 = vst.msk [vmem:[%s397_s16] sm:$0xff] %vm2021_vm1, %v2015_v62 }
 0x88b   : > { %v2017_v1 = vpop.f32.mrf.mxu1 }
 0x88c   : > { %v2018_v2 = vadd.f32 %v2526_v60, %v2017_v1 }
 0x88d   : > { %v2743_v3 = vpop.f32.mrf.mxu1 }
 0x88e   : > { %2023 = vst.msk [vmem:[%s397_s16 + $0x8] sm:$0xff] %vm2021_vm1, %v2018_v2 }
 0x88f PF: > { %s2145_s17 = sand.u32 1, %s3138_s27   ;;  %p3783_p10 = scmp.ne.s32.totalorder %s3757_s12, 0 }
 0x890   : > { %p3784_p9 = scmp.ge.s32.totalorder %s3150_s30, 2  ;;  %s2146_s9 = scalar_lea.sflag [#allocation4], %s2145_s17 }
 0x892   : > { %p2776_p13 = pnand %p3784_p9, %p3783_p10 }
 0x894   : > { %p2777_p5 = pneg %p2776_p13 }
 0x896   : > { %3125 = dma.done.wait (%p2777_p5), %s2146_s9, 512  }
 0x897   : > { %3127 = vsyncadd (%p2777_p5), %s2146_s9, 4294966784  ;;  %s3785_s22 = sadd.s32 4294967294, %s3150_s30  }
 0x898   : > { %s2154_s24 = sand.u32 1, %s3785_s22  }
 0x899   : > { %s2155_s15 = scalar_lea.sflag [#allocation10], %s2154_s24 }
 0x89a   : > { %3129 = dma.done.wait (%p2777_p5), %s2155_s15, 512  }
 0x89b   : > { %3131 = vsyncadd (%p2777_p5), %s2155_s15, 4294966784  ;;  %s2173_s2 = scalar_lea.sflag [#allocation13], %s2154_s24 }
 0x89c   : > { %3133 = dma.done.wait (%p2777_p5), %s2173_s2, 512  }
 0x89d   : > { %3135 = vsyncadd (%p2777_p5), %s2173_s2, 4294966784  ;;  %s3786_s30 = sld [smem:[#allocation22_spill]] }
 0x89e   : > { %s3787_s27 = sld [smem:[#allocation20_spill]] }
 0x89f   : > { %s3788_s28 = sld [smem:[#allocation21_spill]] }
 0x8a0   : > { %s3789_s29 = sld [smem:[#allocation23_spill]] }
 0x8a3   : > { %p29_p0 = scmp.ge.s32.totalorder %s3786_s30, 4  }
 0x8a5   :  { %31 = sbr.rel (!%p29_p0) target bundleno = 16 (0x10), region = 161 }
 0x8aa   :  { %2195 = vsyncpa [#allocation3], 1 }
 0x8ab   :  { %2197 = vsyncpa [#allocation3 + $0x1], 1 }
 0x8ac   :  { %2198 = vsyncpa [#allocation6], 1 }
 0x8ad   :  { %2199 = vsyncpa [#allocation4], 1 }
 0x8ae   :  { %2201 = vsyncpa [#allocation4 + $0x1], 1 }
 0x8af   :  { %2202 = vsyncpa [#allocation10], 1 }
 0x8b0   :  { %2204 = vsyncpa [#allocation10 + $0x1], 1 }
 0x8b1   :  { %2205 = vsyncpa [#allocation13], 1 }
 0x8b2   :  { %2207 = vsyncpa [#allocation13 + $0x1], 1 }

</bundles_post_ra>
